<compile_context>
chip_gen: v6e
topology: v6e:2x2x1
jax: 0.10.0
libtpu: 0.0.40
codegen_flags: <defaults>
</compile_context>

<pallas_src>
import jax
import jax.numpy as jnp
import numpy as np
from jax.experimental import pallas as pl
from jax.experimental.pallas import tpu as pltpu

N_PARAMS = 7


def _pick_tile(dim, target, granule):
    """Largest tile <= target that divides dim and is granule-aligned; else full dim."""
    if dim <= target:
        return dim
    t = (target // granule) * granule
    while t >= granule:
        if dim % t == 0:
            return t
        t -= granule
    return dim


def _gamma_gp_kernel(coeff_ref, d_ref, h_ref, o_ref, acc_ref):
    # grid = (p_tiles [parallel], n_tiles [reduction, innermost])
    n_idx = pl.program_id(1)

    @pl.when(n_idx == 0)
    def _init():
        acc_ref[...] = jnp.zeros_like(acc_ref)

    d = d_ref[...]                                            # (p_tile, n_tile)
    # All 7 params in one body: static unroll; LLO overlaps EUP exp of param k+1
    # with the MXU matmul of param k.
    for k in range(N_PARAMS):
        kern = jnp.exp(d * coeff_ref[k])                      # RBF kernel tile (EUP)
        # (p_tile, n_tile) @ (n_tile, B) -> (p_tile, B): P on the MXU M dimension,
        # no transpose of kern needed.
        acc_ref[k] += jnp.dot(kern, h_ref[k],
                              preferred_element_type=jnp.float32)

    @pl.when(n_idx == pl.num_programs(1) - 1)
    def _finalize():
        # rho channel: sigmoid then clamp to [1e-5, 1-1e-5]
        s0 = acc_ref[0]
        o_ref[0] = jnp.clip(1.0 / (1.0 + jnp.exp(-s0)), 1e-5, 1.0 - 1e-5)
        # remaining channels: _force_positive = 0.01 + 0.9 * softplus-with-guard,
        # clamp to [1e-5, 1e5], and +2.78 on params[-2] (channel 5) after the clamp.
        for k in range(1, N_PARAMS):
            s = acc_ref[k]
            ex = jnp.exp(s)
            sp = jnp.where(ex < 1000.0, jnp.log1p(ex), s)
            v = jnp.clip(0.01 + 0.9 * sp, 1e-5, 100000.0)
            if k == N_PARAMS - 2:
                v = v + 2.78
            o_ref[k] = v


def gamma_gp_final_layer(h, dists, init_ls, *, p_tile_target=512, n_tile_target=1024):
    """h: (B, I, J, 7), dists: (P, I, J), init_ls: (7,) -> (B, P, 7)."""
    B, I, J, C = h.shape
    assert C == N_PARAMS
    P = dists.shape[0]
    N = I * J

    # (7, N, B): per-param h slabs laid out so the MXU contraction is a plain
    # (P, N) @ (N, B) with no in-kernel transpose.
    h_t = jnp.transpose(h.reshape(B, N, C), (2, 1, 0)).astype(jnp.float32)
    d_f = dists.reshape(P, N).astype(jnp.float32)             # (P, N)
    ls = init_ls.astype(jnp.float32)
    coeff = -0.5 / (ls * ls)                                  # (7,) SMEM scalar coeffs

    # Tile targets keep double-buffered blocks well inside v7x's 64 MiB VMEM
    # (and trivially inside v5e/v6e's 128 MiB).
    p_tile = _pick_tile(P, p_tile_target, 8)
    n_tile = _pick_tile(N, n_tile_target, 128)
    grid = (P // p_tile, N // n_tile)

    out = pl.pallas_call(
        _gamma_gp_kernel,
        out_shape=jax.ShapeDtypeStruct((N_PARAMS, P, B), jnp.float32),
        grid_spec=pltpu.PrefetchScalarGridSpec(
            num_scalar_prefetch=0,
            grid=grid,
            in_specs=[
                pl.BlockSpec(memory_space=pltpu.MemorySpace.SMEM),            # coeff (7,)
                pl.BlockSpec((p_tile, n_tile), lambda p, n: (p, n)),          # dists tile
                pl.BlockSpec((N_PARAMS, n_tile, B), lambda p, n: (0, n, 0)),  # h slab tile
            ],
            out_specs=pl.BlockSpec((N_PARAMS, p_tile, B), lambda p, n: (0, p, 0)),
            scratch_shapes=[pltpu.VMEM((N_PARAMS, p_tile, B), jnp.float32)],  # accumulator
        ),
        compiler_params=pltpu.CompilerParams(
            dimension_semantics=("parallel", "arbitrary"),   # P tiles shard across TCs
            vmem_limit_bytes=32 * 1024 * 1024,
        ),
    )(coeff, d_f, h_t)

    return jnp.transpose(out, (2, 1, 0))                      # (B, P, 7)


def _reference(h, dists, ls):
    """Pure-JAX reproduction of the PyTorch forward, for correctness check."""
    params = []
    for k in range(N_PARAMS):
        kern = jnp.exp(-0.5 * dists / (ls[k] ** 2))           # (P, I, J)
        params.append(jnp.einsum('bij,pij->bp', h[..., k], kern))
    rho = jnp.clip(jax.nn.sigmoid(params[0]), 1e-5, 1.0 - 1e-5)
    outs = [rho]
    for k in range(1, N_PARAMS):
        x = params[k]
        ex = jnp.exp(x)
        sp = jnp.where(ex < 1000.0, jnp.log1p(ex), x)
        outs.append(jnp.clip(0.01 + 0.9 * sp, 1e-5, 100000.0))
    outs[-2] = outs[-2] + 2.78
    return jnp.stack(outs, axis=-1)


if __name__ == "__main__":
    B, I, J, P = 2, 16, 16, 8
    key = jax.random.PRNGKey(0)
    k1, k2 = jax.random.split(key)

    h = jax.random.normal(k1, (B, I, J, N_PARAMS), dtype=jnp.float32)
    dists = jax.random.uniform(k2, (P, I, J), dtype=jnp.float32, minval=0.0, maxval=2.0)
    # Deterministic parameter init: all 7 ParamLayers start at the same init_ls,
    # exactly as the module's __init__ does.
    init_ls = jnp.full((N_PARAMS,), 0.5, dtype=jnp.float32)

    out = gamma_gp_final_layer(h, dists, init_ls)
    out = jax.block_until_ready(out)

    ref = _reference(h, dists, init_ls)
    assert out.shape == (B, P, N_PARAMS), out.shape
    np.testing.assert_allclose(np.asarray(out), np.asarray(ref), rtol=1e-4, atol=1e-4)

    print("KERNEL_OK")
</pallas_src>

<mosaic_0001>
module attributes {stable_mosaic.version = 11 : i64} {
  func.func @_gamma_gp_kernel(%arg0: i32, %arg1: i32, %arg2: memref<7xf32, #tpu.memory_space<smem>>, %arg3: memref<8x256xf32, #tpu.memory_space<vmem>>, %arg4: memref<7x256x2xf32, #tpu.memory_space<vmem>>, %arg5: memref<7x8x2xf32, #tpu.memory_space<vmem>>, %arg6: memref<7x8x2xf32, #tpu.memory_space<vmem>>) attributes {dimension_semantics = [#tpu.dimension_semantics<parallel>, #tpu.dimension_semantics<arbitrary>], iteration_bounds = array<i64: 1, 1>, scalar_prefetch = 0 : i64, scratch_operands = 1 : i64, tpu.core_type = #tpu.core_type<tc>, window_params = [{transform_indices = @transform_0, window_bounds = array<i64: 7>}, {transform_indices = @transform_1, window_bounds = array<i64: 8, 256>}, {transform_indices = @transform_2, window_bounds = array<i64: 7, 256, 2>}, {transform_indices = @transform_3, window_bounds = array<i64: 7, 8, 2>}]} {
    %c0_i32 = arith.constant 0 : i32
    %0 = arith.cmpi eq, %arg1, %c0_i32 : i32
    %1 = arith.extui %0 : i1 to i32
    %c0_i32_0 = arith.constant 0 : i32
    %2 = arith.cmpi ne, %1, %c0_i32_0 : i32
    scf.if %2 {
      %cst_74 = arith.constant 0.000000e+00 : f32
      %98 = vector.broadcast %cst_74 : f32 to vector<7x8x2xf32>
      %c0_75 = arith.constant 0 : index
      %c0_76 = arith.constant 0 : index
      %c0_77 = arith.constant 0 : index
      %99 = vector.load %arg6[%c0_75, %c0_76, %c0_77] : memref<7x8x2xf32, #tpu.memory_space<vmem>>, vector<7x8x2xf32>
      tpu.vector_store %arg6[%c0_75, %c0_76, %c0_77], %98 {strides = array<i32>} : memref<7x8x2xf32, #tpu.memory_space<vmem>>, vector<7x8x2xf32>,
    } else {
    }
    %c0 = arith.constant 0 : index
    %c0_1 = arith.constant 0 : index
    %3 = vector.load %arg3[%c0, %c0_1] : memref<8x256xf32, #tpu.memory_space<vmem>>, vector<8x256xf32>
    %c0_2 = arith.constant 0 : index
    %4 = memref.load %arg2[%c0_2] : memref<7xf32, #tpu.memory_space<smem>>
    %5 = vector.broadcast %4 : f32 to vector<8x256xf32>
    %6 = arith.mulf %3, %5 : vector<8x256xf32>
    %7 = math.exp %6 : vector<8x256xf32>
    %c0_3 = arith.constant 0 : index
    %c0_4 = arith.constant 0 : index
    %c0_5 = arith.constant 0 : index
    %8 = vector.load %arg6[%c0_3, %c0_4, %c0_5] : memref<7x8x2xf32, #tpu.memory_space<vmem>>, vector<1x8x2xf32>
    %9 = vector.shape_cast %8 : vector<1x8x2xf32> to vector<8x2xf32>
    %c0_6 = arith.constant 0 : index
    %c0_7 = arith.constant 0 : index
    %c0_8 = arith.constant 0 : index
    %10 = vector.load %arg4[%c0_6, %c0_7, %c0_8] : memref<7x256x2xf32, #tpu.memory_space<vmem>>, vector<1x256x2xf32>
    %11 = vector.shape_cast %10 : vector<1x256x2xf32> to vector<256x2xf32>
    %cst = arith.constant dense<0.000000e+00> : vector<8x2xf32>
    %12 = tpu.matmul %7, %11, %cst {dimension_numbers = #tpu.dot_dimension_numbers<[1], [0], [0], [1], [0, 0, 1, 1], [], []>} : vector<8x256xf32>, vector<256x2xf32>, vector<8x2xf32> -> vector<8x2xf32>
    %13 = arith.addf %9, %12 : vector<8x2xf32>
    %c0_9 = arith.constant 0 : index
    %c0_10 = arith.constant 0 : index
    %c0_11 = arith.constant 0 : index
    %14 = vector.load %arg6[%c0_9, %c0_10, %c0_11] : memref<7x8x2xf32, #tpu.memory_space<vmem>>, vector<1x8x2xf32>
    %15 = vector.shape_cast %14 : vector<1x8x2xf32> to vector<8x2xf32>
    %16 = vector.shape_cast %13 : vector<8x2xf32> to vector<1x8x2xf32>
    tpu.vector_store %arg6[%c0_9, %c0_10, %c0_11], %16 {strides = array<i32>} : memref<7x8x2xf32, #tpu.memory_space<vmem>>, vector<1x8x2xf32>,
    %c1 = arith.constant 1 : index
    %17 = memref.load %arg2[%c1] : memref<7xf32, #tpu.memory_space<smem>>
    %18 = vector.broadcast %17 : f32 to vector<8x256xf32>
    %19 = arith.mulf %3, %18 : vector<8x256xf32>
    %20 = math.exp %19 : vector<8x256xf32>
    %c1_12 = arith.constant 1 : index
    %c0_13 = arith.constant 0 : index
    %c0_14 = arith.constant 0 : index
    %21 = vector.load %arg6[%c1_12, %c0_13, %c0_14] : memref<7x8x2xf32, #tpu.memory_space<vmem>>, vector<1x8x2xf32>
    %22 = vector.shape_cast %21 : vector<1x8x2xf32> to vector<8x2xf32>
    %c1_15 = arith.constant 1 : index
    %c0_16 = arith.constant 0 : index
    %c0_17 = arith.constant 0 : index
    %23 = vector.load %arg4[%c1_15, %c0_16, %c0_17] : memref<7x256x2xf32, #tpu.memory_space<vmem>>, vector<1x256x2xf32>
    %24 = vector.shape_cast %23 : vector<1x256x2xf32> to vector<256x2xf32>
    %cst_18 = arith.constant dense<0.000000e+00> : vector<8x2xf32>
    %25 = tpu.matmul %20, %24, %cst_18 {dimension_numbers = #tpu.dot_dimension_numbers<[1], [0], [0], [1], [0, 0, 1, 1], [], []>} : vector<8x256xf32>, vector<256x2xf32>, vector<8x2xf32> -> vector<8x2xf32>
    %26 = arith.addf %22, %25 : vector<8x2xf32>
    %c1_19 = arith.constant 1 : index
    %c0_20 = arith.constant 0 : index
    %c0_21 = arith.constant 0 : index
    %27 = vector.load %arg6[%c1_19, %c0_20, %c0_21] : memref<7x8x2xf32, #tpu.memory_space<vmem>>, vector<1x8x2xf32>
    %28 = vector.shape_cast %27 : vector<1x8x2xf32> to vector<8x2xf32>
    %29 = vector.shape_cast %26 : vector<8x2xf32> to vector<1x8x2xf32>
    tpu.vector_store %arg6[%c1_19, %c0_20, %c0_21], %29 {strides = array<i32>} : memref<7x8x2xf32, #tpu.memory_space<vmem>>, vector<1x8x2xf32>,
    %c2 = arith.constant 2 : index
    %30 = memref.load %arg2[%c2] : memref<7xf32, #tpu.memory_space<smem>>
    %31 = vector.broadcast %30 : f32 to vector<8x256xf32>
    %32 = arith.mulf %3, %31 : vector<8x256xf32>
    %33 = math.exp %32 : vector<8x256xf32>
    %c2_22 = arith.constant 2 : index
    %c0_23 = arith.constant 0 : index
    %c0_24 = arith.constant 0 : index
    %34 = vector.load %arg6[%c2_22, %c0_23, %c0_24] : memref<7x8x2xf32, #tpu.memory_space<vmem>>, vector<1x8x2xf32>
    %35 = vector.shape_cast %34 : vector<1x8x2xf32> to vector<8x2xf32>
    %c2_25 = arith.constant 2 : index
    %c0_26 = arith.constant 0 : index
    %c0_27 = arith.constant 0 : index
    %36 = vector.load %arg4[%c2_25, %c0_26, %c0_27] : memref<7x256x2xf32, #tpu.memory_space<vmem>>, vector<1x256x2xf32>
    %37 = vector.shape_cast %36 : vector<1x256x2xf32> to vector<256x2xf32>
    %cst_28 = arith.constant dense<0.000000e+00> : vector<8x2xf32>
    %38 = tpu.matmul %33, %37, %cst_28 {dimension_numbers = #tpu.dot_dimension_numbers<[1], [0], [0], [1], [0, 0, 1, 1], [], []>} : vector<8x256xf32>, vector<256x2xf32>, vector<8x2xf32> -> vector<8x2xf32>
    %39 = arith.addf %35, %38 : vector<8x2xf32>
    %c2_29 = arith.constant 2 : index
    %c0_30 = arith.constant 0 : index
    %c0_31 = arith.constant 0 : index
    %40 = vector.load %arg6[%c2_29, %c0_30, %c0_31] : memref<7x8x2xf32, #tpu.memory_space<vmem>>, vector<1x8x2xf32>
    %41 = vector.shape_cast %40 : vector<1x8x2xf32> to vector<8x2xf32>
    %42 = vector.shape_cast %39 : vector<8x2xf32> to vector<1x8x2xf32>
    tpu.vector_store %arg6[%c2_29, %c0_30, %c0_31], %42 {strides = array<i32>} : memref<7x8x2xf32, #tpu.memory_space<vmem>>, vector<1x8x2xf32>,
    %c3 = arith.constant 3 : index
    %43 = memref.load %arg2[%c3] : memref<7xf32, #tpu.memory_space<smem>>
    %44 = vector.broadcast %43 : f32 to vector<8x256xf32>
    %45 = arith.mulf %3, %44 : vector<8x256xf32>
    %46 = math.exp %45 : vector<8x256xf32>
    %c3_32 = arith.constant 3 : index
    %c0_33 = arith.constant 0 : index
    %c0_34 = arith.constant 0 : index
    %47 = vector.load %arg6[%c3_32, %c0_33, %c0_34] : memref<7x8x2xf32, #tpu.memory_space<vmem>>, vector<1x8x2xf32>
    %48 = vector.shape_cast %47 : vector<1x8x2xf32> to vector<8x2xf32>
    %c3_35 = arith.constant 3 : index
    %c0_36 = arith.constant 0 : index
    %c0_37 = arith.constant 0 : index
    %49 = vector.load %arg4[%c3_35, %c0_36, %c0_37] : memref<7x256x2xf32, #tpu.memory_space<vmem>>, vector<1x256x2xf32>
    %50 = vector.shape_cast %49 : vector<1x256x2xf32> to vector<256x2xf32>
    %cst_38 = arith.constant dense<0.000000e+00> : vector<8x2xf32>
    %51 = tpu.matmul %46, %50, %cst_38 {dimension_numbers = #tpu.dot_dimension_numbers<[1], [0], [0], [1], [0, 0, 1, 1], [], []>} : vector<8x256xf32>, vector<256x2xf32>, vector<8x2xf32> -> vector<8x2xf32>
    %52 = arith.addf %48, %51 : vector<8x2xf32>
    %c3_39 = arith.constant 3 : index
    %c0_40 = arith.constant 0 : index
    %c0_41 = arith.constant 0 : index
    %53 = vector.load %arg6[%c3_39, %c0_40, %c0_41] : memref<7x8x2xf32, #tpu.memory_space<vmem>>, vector<1x8x2xf32>
    %54 = vector.shape_cast %53 : vector<1x8x2xf32> to vector<8x2xf32>
    %55 = vector.shape_cast %52 : vector<8x2xf32> to vector<1x8x2xf32>
    tpu.vector_store %arg6[%c3_39, %c0_40, %c0_41], %55 {strides = array<i32>} : memref<7x8x2xf32, #tpu.memory_space<vmem>>, vector<1x8x2xf32>,
    %c4 = arith.constant 4 : index
    %56 = memref.load %arg2[%c4] : memref<7xf32, #tpu.memory_space<smem>>
    %57 = vector.broadcast %56 : f32 to vector<8x256xf32>
    %58 = arith.mulf %3, %57 : vector<8x256xf32>
    %59 = math.exp %58 : vector<8x256xf32>
    %c4_42 = arith.constant 4 : index
    %c0_43 = arith.constant 0 : index
    %c0_44 = arith.constant 0 : index
    %60 = vector.load %arg6[%c4_42, %c0_43, %c0_44] : memref<7x8x2xf32, #tpu.memory_space<vmem>>, vector<1x8x2xf32>
    %61 = vector.shape_cast %60 : vector<1x8x2xf32> to vector<8x2xf32>
    %c4_45 = arith.constant 4 : index
    %c0_46 = arith.constant 0 : index
    %c0_47 = arith.constant 0 : index
    %62 = vector.load %arg4[%c4_45, %c0_46, %c0_47] : memref<7x256x2xf32, #tpu.memory_space<vmem>>, vector<1x256x2xf32>
    %63 = vector.shape_cast %62 : vector<1x256x2xf32> to vector<256x2xf32>
    %cst_48 = arith.constant dense<0.000000e+00> : vector<8x2xf32>
    %64 = tpu.matmul %59, %63, %cst_48 {dimension_numbers = #tpu.dot_dimension_numbers<[1], [0], [0], [1], [0, 0, 1, 1], [], []>} : vector<8x256xf32>, vector<256x2xf32>, vector<8x2xf32> -> vector<8x2xf32>
    %65 = arith.addf %61, %64 : vector<8x2xf32>
    %c4_49 = arith.constant 4 : index
    %c0_50 = arith.constant 0 : index
    %c0_51 = arith.constant 0 : index
    %66 = vector.load %arg6[%c4_49, %c0_50, %c0_51] : memref<7x8x2xf32, #tpu.memory_space<vmem>>, vector<1x8x2xf32>
    %67 = vector.shape_cast %66 : vector<1x8x2xf32> to vector<8x2xf32>
    %68 = vector.shape_cast %65 : vector<8x2xf32> to vector<1x8x2xf32>
    tpu.vector_store %arg6[%c4_49, %c0_50, %c0_51], %68 {strides = array<i32>} : memref<7x8x2xf32, #tpu.memory_space<vmem>>, vector<1x8x2xf32>,
    %c5 = arith.constant 5 : index
    %69 = memref.load %arg2[%c5] : memref<7xf32, #tpu.memory_space<smem>>
    %70 = vector.broadcast %69 : f32 to vector<8x256xf32>
    %71 = arith.mulf %3, %70 : vector<8x256xf32>
    %72 = math.exp %71 : vector<8x256xf32>
    %c5_52 = arith.constant 5 : index
    %c0_53 = arith.constant 0 : index
    %c0_54 = arith.constant 0 : index
    %73 = vector.load %arg6[%c5_52, %c0_53, %c0_54] : memref<7x8x2xf32, #tpu.memory_space<vmem>>, vector<1x8x2xf32>
    %74 = vector.shape_cast %73 : vector<1x8x2xf32> to vector<8x2xf32>
    %c5_55 = arith.constant 5 : index
    %c0_56 = arith.constant 0 : index
    %c0_57 = arith.constant 0 : index
    %75 = vector.load %arg4[%c5_55, %c0_56, %c0_57] : memref<7x256x2xf32, #tpu.memory_space<vmem>>, vector<1x256x2xf32>
    %76 = vector.shape_cast %75 : vector<1x256x2xf32> to vector<256x2xf32>
    %cst_58 = arith.constant dense<0.000000e+00> : vector<8x2xf32>
    %77 = tpu.matmul %72, %76, %cst_58 {dimension_numbers = #tpu.dot_dimension_numbers<[1], [0], [0], [1], [0, 0, 1, 1], [], []>} : vector<8x256xf32>, vector<256x2xf32>, vector<8x2xf32> -> vector<8x2xf32>
    %78 = arith.addf %74, %77 : vector<8x2xf32>
    %c5_59 = arith.constant 5 : index
    %c0_60 = arith.constant 0 : index
    %c0_61 = arith.constant 0 : index
    %79 = vector.load %arg6[%c5_59, %c0_60, %c0_61] : memref<7x8x2xf32, #tpu.memory_space<vmem>>, vector<1x8x2xf32>
    %80 = vector.shape_cast %79 : vector<1x8x2xf32> to vector<8x2xf32>
    %81 = vector.shape_cast %78 : vector<8x2xf32> to vector<1x8x2xf32>
    tpu.vector_store %arg6[%c5_59, %c0_60, %c0_61], %81 {strides = array<i32>} : memref<7x8x2xf32, #tpu.memory_space<vmem>>, vector<1x8x2xf32>,
    %c6 = arith.constant 6 : index
    %82 = memref.load %arg2[%c6] : memref<7xf32, #tpu.memory_space<smem>>
    %83 = vector.broadcast %82 : f32 to vector<8x256xf32>
    %84 = arith.mulf %3, %83 : vector<8x256xf32>
    %85 = math.exp %84 : vector<8x256xf32>
    %c6_62 = arith.constant 6 : index
    %c0_63 = arith.constant 0 : index
    %c0_64 = arith.constant 0 : index
    %86 = vector.load %arg6[%c6_62, %c0_63, %c0_64] : memref<7x8x2xf32, #tpu.memory_space<vmem>>, vector<1x8x2xf32>
    %87 = vector.shape_cast %86 : vector<1x8x2xf32> to vector<8x2xf32>
    %c6_65 = arith.constant 6 : index
    %c0_66 = arith.constant 0 : index
    %c0_67 = arith.constant 0 : index
    %88 = vector.load %arg4[%c6_65, %c0_66, %c0_67] : memref<7x256x2xf32, #tpu.memory_space<vmem>>, vector<1x256x2xf32>
    %89 = vector.shape_cast %88 : vector<1x256x2xf32> to vector<256x2xf32>
    %cst_68 = arith.constant dense<0.000000e+00> : vector<8x2xf32>
    %90 = tpu.matmul %85, %89, %cst_68 {dimension_numbers = #tpu.dot_dimension_numbers<[1], [0], [0], [1], [0, 0, 1, 1], [], []>} : vector<8x256xf32>, vector<256x2xf32>, vector<8x2xf32> -> vector<8x2xf32>
    %91 = arith.addf %87, %90 : vector<8x2xf32>
    %c6_69 = arith.constant 6 : index
    %c0_70 = arith.constant 0 : index
    %c0_71 = arith.constant 0 : index
    %92 = vector.load %arg6[%c6_69, %c0_70, %c0_71] : memref<7x8x2xf32, #tpu.memory_space<vmem>>, vector<1x8x2xf32>
    %93 = vector.shape_cast %92 : vector<1x8x2xf32> to vector<8x2xf32>
    %94 = vector.shape_cast %91 : vector<8x2xf32> to vector<1x8x2xf32>
    tpu.vector_store %arg6[%c6_69, %c0_70, %c0_71], %94 {strides = array<i32>} : memref<7x8x2xf32, #tpu.memory_space<vmem>>, vector<1x8x2xf32>,
    %c0_i32_72 = arith.constant 0 : i32
    %95 = arith.cmpi eq, %arg1, %c0_i32_72 : i32
    %96 = arith.extui %95 : i1 to i32
    %c0_i32_73 = arith.constant 0 : i32
    %97 = arith.cmpi ne, %96, %c0_i32_73 : i32
    scf.if %97 {
      %c0_74 = arith.constant 0 : index
      %c0_75 = arith.constant 0 : index
      %c0_76 = arith.constant 0 : index
      %98 = vector.load %arg6[%c0_74, %c0_75, %c0_76] : memref<7x8x2xf32, #tpu.memory_space<vmem>>, vector<1x8x2xf32>
      %99 = vector.shape_cast %98 : vector<1x8x2xf32> to vector<8x2xf32>
      %cst_77 = arith.constant 0.000000e+00 : f32
      %100 = vector.broadcast %cst_77 : f32 to vector<8x2xf32>
      %101 = arith.subf %100, %99 : vector<8x2xf32>
      %102 = math.exp %101 : vector<8x2xf32>
      %cst_78 = arith.constant 1.000000e+00 : f32
      %103 = vector.broadcast %cst_78 : f32 to vector<8x2xf32>
      %104 = arith.addf %103, %102 : vector<8x2xf32>
      %cst_79 = arith.constant 1.000000e+00 : f32
      %105 = vector.broadcast %cst_79 : f32 to vector<8x2xf32>
      %106 = arith.divf %105, %104 : vector<8x2xf32>
      %cst_80 = arith.constant 9.99999974E-6 : f32
      %cst_81 = arith.constant 0.999989986 : f32
      %107 = vector.broadcast %cst_80 : f32 to vector<8x2xf32>
      %108 = arith.maximumf %107, %106 : vector<8x2xf32>
      %109 = vector.broadcast %cst_81 : f32 to vector<8x2xf32>
      %110 = arith.minimumf %109, %108 : vector<8x2xf32>
      %c0_82 = arith.constant 0 : index
      %c0_83 = arith.constant 0 : index
      %c0_84 = arith.constant 0 : index
      %111 = vector.load %arg5[%c0_82, %c0_83, %c0_84] : memref<7x8x2xf32, #tpu.memory_space<vmem>>, vector<1x8x2xf32>
      %112 = vector.shape_cast %111 : vector<1x8x2xf32> to vector<8x2xf32>
      %113 = vector.shape_cast %110 : vector<8x2xf32> to vector<1x8x2xf32>
      tpu.vector_store %arg5[%c0_82, %c0_83, %c0_84], %113 {strides = array<i32>} : memref<7x8x2xf32, #tpu.memory_space<vmem>>, vector<1x8x2xf32>,
      %c1_85 = arith.constant 1 : index
      %c0_86 = arith.constant 0 : index
      %c0_87 = arith.constant 0 : index
      %114 = vector.load %arg6[%c1_85, %c0_86, %c0_87] : memref<7x8x2xf32, #tpu.memory_space<vmem>>, vector<1x8x2xf32>
      %115 = vector.shape_cast %114 : vector<1x8x2xf32> to vector<8x2xf32>
      %116 = math.exp %115 : vector<8x2xf32>
      %cst_88 = arith.constant 1.000000e+03 : f32
      %117 = vector.broadcast %cst_88 : f32 to vector<8x2xf32>
      %118 = arith.cmpf olt, %116, %117 : vector<8x2xf32>
      %119 = math.log1p %116 : vector<8x2xf32>
      %120 = arith.select %118, %119, %115 : vector<8x2xi1>, vector<8x2xf32>
      %cst_89 = arith.constant 0.899999976 : f32
      %121 = vector.broadcast %cst_89 : f32 to vector<8x2xf32>
      %122 = arith.mulf %121, %120 : vector<8x2xf32>
      %cst_90 = arith.constant 0.00999999977 : f32
      %123 = vector.broadcast %cst_90 : f32 to vector<8x2xf32>
      %124 = arith.addf %123, %122 : vector<8x2xf32>
      %cst_91 = arith.constant 9.99999974E-6 : f32
      %cst_92 = arith.constant 1.000000e+05 : f32
      %125 = vector.broadcast %cst_91 : f32 to vector<8x2xf32>
      %126 = arith.maximumf %125, %124 : vector<8x2xf32>
      %127 = vector.broadcast %cst_92 : f32 to vector<8x2xf32>
      %128 = arith.minimumf %127, %126 : vector<8x2xf32>
      %c1_93 = arith.constant 1 : index
      %c0_94 = arith.constant 0 : index
      %c0_95 = arith.constant 0 : index
      %129 = vector.load %arg5[%c1_93, %c0_94, %c0_95] : memref<7x8x2xf32, #tpu.memory_space<vmem>>, vector<1x8x2xf32>
      %130 = vector.shape_cast %129 : vector<1x8x2xf32> to vector<8x2xf32>
      %131 = vector.shape_cast %128 : vector<8x2xf32> to vector<1x8x2xf32>
      tpu.vector_store %arg5[%c1_93, %c0_94, %c0_95], %131 {strides = array<i32>} : memref<7x8x2xf32, #tpu.memory_space<vmem>>, vector<1x8x2xf32>,
      %c2_96 = arith.constant 2 : index
      %c0_97 = arith.constant 0 : index
      %c0_98 = arith.constant 0 : index
      %132 = vector.load %arg6[%c2_96, %c0_97, %c0_98] : memref<7x8x2xf32, #tpu.memory_space<vmem>>, vector<1x8x2xf32>
      %133 = vector.shape_cast %132 : vector<1x8x2xf32> to vector<8x2xf32>
      %134 = math.exp %133 : vector<8x2xf32>
      %cst_99 = arith.constant 1.000000e+03 : f32
      %135 = vector.broadcast %cst_99 : f32 to vector<8x2xf32>
      %136 = arith.cmpf olt, %134, %135 : vector<8x2xf32>
      %137 = math.log1p %134 : vector<8x2xf32>
      %138 = arith.select %136, %137, %133 : vector<8x2xi1>, vector<8x2xf32>
      %cst_100 = arith.constant 0.899999976 : f32
      %139 = vector.broadcast %cst_100 : f32 to vector<8x2xf32>
      %140 = arith.mulf %139, %138 : vector<8x2xf32>
      %cst_101 = arith.constant 0.00999999977 : f32
      %141 = vector.broadcast %cst_101 : f32 to vector<8x2xf32>
      %142 = arith.addf %141, %140 : vector<8x2xf32>
      %cst_102 = arith.constant 9.99999974E-6 : f32
      %cst_103 = arith.constant 1.000000e+05 : f32
      %143 = vector.broadcast %cst_102 : f32 to vector<8x2xf32>
      %144 = arith.maximumf %143, %142 : vector<8x2xf32>
      %145 = vector.broadcast %cst_103 : f32 to vector<8x2xf32>
      %146 = arith.minimumf %145, %144 : vector<8x2xf32>
      %c2_104 = arith.constant 2 : index
      %c0_105 = arith.constant 0 : index
      %c0_106 = arith.constant 0 : index
      %147 = vector.load %arg5[%c2_104, %c0_105, %c0_106] : memref<7x8x2xf32, #tpu.memory_space<vmem>>, vector<1x8x2xf32>
      %148 = vector.shape_cast %147 : vector<1x8x2xf32> to vector<8x2xf32>
      %149 = vector.shape_cast %146 : vector<8x2xf32> to vector<1x8x2xf32>
      tpu.vector_store %arg5[%c2_104, %c0_105, %c0_106], %149 {strides = array<i32>} : memref<7x8x2xf32, #tpu.memory_space<vmem>>, vector<1x8x2xf32>,
      %c3_107 = arith.constant 3 : index
      %c0_108 = arith.constant 0 : index
      %c0_109 = arith.constant 0 : index
      %150 = vector.load %arg6[%c3_107, %c0_108, %c0_109] : memref<7x8x2xf32, #tpu.memory_space<vmem>>, vector<1x8x2xf32>
      %151 = vector.shape_cast %150 : vector<1x8x2xf32> to vector<8x2xf32>
      %152 = math.exp %151 : vector<8x2xf32>
      %cst_110 = arith.constant 1.000000e+03 : f32
      %153 = vector.broadcast %cst_110 : f32 to vector<8x2xf32>
      %154 = arith.cmpf olt, %152, %153 : vector<8x2xf32>
      %155 = math.log1p %152 : vector<8x2xf32>
      %156 = arith.select %154, %155, %151 : vector<8x2xi1>, vector<8x2xf32>
      %cst_111 = arith.constant 0.899999976 : f32
      %157 = vector.broadcast %cst_111 : f32 to vector<8x2xf32>
      %158 = arith.mulf %157, %156 : vector<8x2xf32>
      %cst_112 = arith.constant 0.00999999977 : f32
      %159 = vector.broadcast %cst_112 : f32 to vector<8x2xf32>
      %160 = arith.addf %159, %158 : vector<8x2xf32>
      %cst_113 = arith.constant 9.99999974E-6 : f32
      %cst_114 = arith.constant 1.000000e+05 : f32
      %161 = vector.broadcast %cst_113 : f32 to vector<8x2xf32>
      %162 = arith.maximumf %161, %160 : vector<8x2xf32>
      %163 = vector.broadcast %cst_114 : f32 to vector<8x2xf32>
      %164 = arith.minimumf %163, %162 : vector<8x2xf32>
      %c3_115 = arith.constant 3 : index
      %c0_116 = arith.constant 0 : index
      %c0_117 = arith.constant 0 : index
      %165 = vector.load %arg5[%c3_115, %c0_116, %c0_117] : memref<7x8x2xf32, #tpu.memory_space<vmem>>, vector<1x8x2xf32>
      %166 = vector.shape_cast %165 : vector<1x8x2xf32> to vector<8x2xf32>
      %167 = vector.shape_cast %164 : vector<8x2xf32> to vector<1x8x2xf32>
      tpu.vector_store %arg5[%c3_115, %c0_116, %c0_117], %167 {strides = array<i32>} : memref<7x8x2xf32, #tpu.memory_space<vmem>>, vector<1x8x2xf32>,
      %c4_118 = arith.constant 4 : index
      %c0_119 = arith.constant 0 : index
      %c0_120 = arith.constant 0 : index
      %168 = vector.load %arg6[%c4_118, %c0_119, %c0_120] : memref<7x8x2xf32, #tpu.memory_space<vmem>>, vector<1x8x2xf32>
      %169 = vector.shape_cast %168 : vector<1x8x2xf32> to vector<8x2xf32>
      %170 = math.exp %169 : vector<8x2xf32>
      %cst_121 = arith.constant 1.000000e+03 : f32
      %171 = vector.broadcast %cst_121 : f32 to vector<8x2xf32>
      %172 = arith.cmpf olt, %170, %171 : vector<8x2xf32>
      %173 = math.log1p %170 : vector<8x2xf32>
      %174 = arith.select %172, %173, %169 : vector<8x2xi1>, vector<8x2xf32>
      %cst_122 = arith.constant 0.899999976 : f32
      %175 = vector.broadcast %cst_122 : f32 to vector<8x2xf32>
      %176 = arith.mulf %175, %174 : vector<8x2xf32>
      %cst_123 = arith.constant 0.00999999977 : f32
      %177 = vector.broadcast %cst_123 : f32 to vector<8x2xf32>
      %178 = arith.addf %177, %176 : vector<8x2xf32>
      %cst_124 = arith.constant 9.99999974E-6 : f32
      %cst_125 = arith.constant 1.000000e+05 : f32
      %179 = vector.broadcast %cst_124 : f32 to vector<8x2xf32>
      %180 = arith.maximumf %179, %178 : vector<8x2xf32>
      %181 = vector.broadcast %cst_125 : f32 to vector<8x2xf32>
      %182 = arith.minimumf %181, %180 : vector<8x2xf32>
      %c4_126 = arith.constant 4 : index
      %c0_127 = arith.constant 0 : index
      %c0_128 = arith.constant 0 : index
      %183 = vector.load %arg5[%c4_126, %c0_127, %c0_128] : memref<7x8x2xf32, #tpu.memory_space<vmem>>, vector<1x8x2xf32>
      %184 = vector.shape_cast %183 : vector<1x8x2xf32> to vector<8x2xf32>
      %185 = vector.shape_cast %182 : vector<8x2xf32> to vector<1x8x2xf32>
      tpu.vector_store %arg5[%c4_126, %c0_127, %c0_128], %185 {strides = array<i32>} : memref<7x8x2xf32, #tpu.memory_space<vmem>>, vector<1x8x2xf32>,
      %c5_129 = arith.constant 5 : index
      %c0_130 = arith.constant 0 : index
      %c0_131 = arith.constant 0 : index
      %186 = vector.load %arg6[%c5_129, %c0_130, %c0_131] : memref<7x8x2xf32, #tpu.memory_space<vmem>>, vector<1x8x2xf32>
      %187 = vector.shape_cast %186 : vector<1x8x2xf32> to vector<8x2xf32>
      %188 = math.exp %187 : vector<8x2xf32>
      %cst_132 = arith.constant 1.000000e+03 : f32
      %189 = vector.broadcast %cst_132 : f32 to vector<8x2xf32>
      %190 = arith.cmpf olt, %188, %189 : vector<8x2xf32>
      %191 = math.log1p %188 : vector<8x2xf32>
      %192 = arith.select %190, %191, %187 : vector<8x2xi1>, vector<8x2xf32>
      %cst_133 = arith.constant 0.899999976 : f32
      %193 = vector.broadcast %cst_133 : f32 to vector<8x2xf32>
      %194 = arith.mulf %193, %192 : vector<8x2xf32>
      %cst_134 = arith.constant 0.00999999977 : f32
      %195 = vector.broadcast %cst_134 : f32 to vector<8x2xf32>
      %196 = arith.addf %195, %194 : vector<8x2xf32>
      %cst_135 = arith.constant 9.99999974E-6 : f32
      %cst_136 = arith.constant 1.000000e+05 : f32
      %197 = vector.broadcast %cst_135 : f32 to vector<8x2xf32>
      %198 = arith.maximumf %197, %196 : vector<8x2xf32>
      %199 = vector.broadcast %cst_136 : f32 to vector<8x2xf32>
      %200 = arith.minimumf %199, %198 : vector<8x2xf32>
      %cst_137 = arith.constant 2.780000e+00 : f32
      %201 = vector.broadcast %cst_137 : f32 to vector<8x2xf32>
      %202 = arith.addf %200, %201 : vector<8x2xf32>
      %c5_138 = arith.constant 5 : index
      %c0_139 = arith.constant 0 : index
      %c0_140 = arith.constant 0 : index
      %203 = vector.load %arg5[%c5_138, %c0_139, %c0_140] : memref<7x8x2xf32, #tpu.memory_space<vmem>>, vector<1x8x2xf32>
      %204 = vector.shape_cast %203 : vector<1x8x2xf32> to vector<8x2xf32>
      %205 = vector.shape_cast %202 : vector<8x2xf32> to vector<1x8x2xf32>
      tpu.vector_store %arg5[%c5_138, %c0_139, %c0_140], %205 {strides = array<i32>} : memref<7x8x2xf32, #tpu.memory_space<vmem>>, vector<1x8x2xf32>,
      %c6_141 = arith.constant 6 : index
      %c0_142 = arith.constant 0 : index
      %c0_143 = arith.constant 0 : index
      %206 = vector.load %arg6[%c6_141, %c0_142, %c0_143] : memref<7x8x2xf32, #tpu.memory_space<vmem>>, vector<1x8x2xf32>
      %207 = vector.shape_cast %206 : vector<1x8x2xf32> to vector<8x2xf32>
      %208 = math.exp %207 : vector<8x2xf32>
      %cst_144 = arith.constant 1.000000e+03 : f32
      %209 = vector.broadcast %cst_144 : f32 to vector<8x2xf32>
      %210 = arith.cmpf olt, %208, %209 : vector<8x2xf32>
      %211 = math.log1p %208 : vector<8x2xf32>
      %212 = arith.select %210, %211, %207 : vector<8x2xi1>, vector<8x2xf32>
      %cst_145 = arith.constant 0.899999976 : f32
      %213 = vector.broadcast %cst_145 : f32 to vector<8x2xf32>
      %214 = arith.mulf %213, %212 : vector<8x2xf32>
      %cst_146 = arith.constant 0.00999999977 : f32
      %215 = vector.broadcast %cst_146 : f32 to vector<8x2xf32>
      %216 = arith.addf %215, %214 : vector<8x2xf32>
      %cst_147 = arith.constant 9.99999974E-6 : f32
      %cst_148 = arith.constant 1.000000e+05 : f32
      %217 = vector.broadcast %cst_147 : f32 to vector<8x2xf32>
      %218 = arith.maximumf %217, %216 : vector<8x2xf32>
      %219 = vector.broadcast %cst_148 : f32 to vector<8x2xf32>
      %220 = arith.minimumf %219, %218 : vector<8x2xf32>
      %c6_149 = arith.constant 6 : index
      %c0_150 = arith.constant 0 : index
      %c0_151 = arith.constant 0 : index
      %221 = vector.load %arg5[%c6_149, %c0_150, %c0_151] : memref<7x8x2xf32, #tpu.memory_space<vmem>>, vector<1x8x2xf32>
      %222 = vector.shape_cast %221 : vector<1x8x2xf32> to vector<8x2xf32>
      %223 = vector.shape_cast %220 : vector<8x2xf32> to vector<1x8x2xf32>
      tpu.vector_store %arg5[%c6_149, %c0_150, %c0_151], %223 {strides = array<i32>} : memref<7x8x2xf32, #tpu.memory_space<vmem>>, vector<1x8x2xf32>,
    } else {
    }
    return
  }
  func.func @transform_0(%arg0: i32, %arg1: i32) -> i32 {
    %c0_i32 = arith.constant 0 : i32
    %c0_i32_0 = arith.constant 0 : i32
    return %c0_i32 : i32
  }
  func.func @transform_1(%arg0: i32, %arg1: i32) -> (i32, i32) {
    %c0_i32 = arith.constant 0 : i32
    return %arg0, %arg1 : i32, i32
  }
  func.func @transform_2(%arg0: i32, %arg1: i32) -> (i32, i32, i32) {
    %c0_i32 = arith.constant 0 : i32
    %c0_i32_0 = arith.constant 0 : i32
    %c0_i32_1 = arith.constant 0 : i32
    return %c0_i32, %arg1, %c0_i32_0 : i32, i32, i32
  }
  func.func @transform_3(%arg0: i32, %arg1: i32) -> (i32, i32, i32) {
    %c0_i32 = arith.constant 0 : i32
    %c0_i32_0 = arith.constant 0 : i32
    %c0_i32_1 = arith.constant 0 : i32
    return %c0_i32, %arg0, %c0_i32_0 : i32, i32, i32
  }
}

</mosaic_0001>

<bundles_post_ra>
// kernel: tpu_custom_call.1
= control target key start
LH: loop header
LB: loop body
LE: loop exit
PB: predicated region body
PF: predicated region fallthrough
CT: control target
= control target key end

     0   :  { %8 = vsyncpa [#allocation4], 0  ;;  %s2297_s0 = inlined_call_operand.vmem [shape: f32[7], index: 0, kind: input, shape index: {}]   ;;  %s2298_s1 = inlined_call_operand.vmem [shape: f32[8,256], index: 1, kind: input, shape index: {}]   ;;  %s2299_s2 = inlined_call_operand.vmem [shape: f32[7,256,2], index: 2, kind: input, shape index: {}]   ;;  %s2300_s3 = inlined_call_operand.vmem [shape: f32[7,8,2], index: 3, kind: output, shape index: {}]  }
   0x1   :  { %s15_s14 = sshll.u32 %s2297_s0, 4  ;;  %s16_s14 = int_to_ptr.vmem [resolvable:$true] %s15_s14 }
   0x2   :  { %s1491_s15 = scalar_lea.vmem %s16_s14, 16  ;;  %p1496_p1 = scmp.lt.s32.totalorder %s16_s14, %s16_s14 }
   0x3   :  { %p1492_p0 = scmp.ne.s32.totalorder %s16_s14, %s1491_s15  ;;  %p1497_p2 = scmp.lt.s32.totalorder %s1491_s15, %s1491_s15 }
   0x5   :  { %p1498_p3 = por %p1497_p2, %p1496_p1 }
   0x7   :  { %p1499_p4 = pnand %p1498_p3, %p1492_p0 }
   0x9   :  { %1502 = shalt.err (!%p1499_p4)
}
   0xa   :  { %s1505_s16 = smov [#allocation3]  }
   0xb   :  { %18 = dma.vmem_to_smem %s16_s14, 16, %s1505_s16, [#allocation4]  }
   0xc   :  { %1503 = dma.done.wait [#allocation4], 16  }
   0xd   :  { %1504 = vsyncadd [#allocation4], 4294967280 }
   0xe   :  { %26 = sfence }
   0xf   :  { %v81_v0 = vld [vmem:[%s2299_s2 + $0xf8] sm:$0xff]  ;;  %v80_v4 = vld [vmem:[%s2299_s2 + $0xf0] sm:$0xff]  ;;  %v79_v8 = vld [vmem:[%s2299_s2 + $0xe8] sm:$0xff]  ;;  %s1614_s17 = sld [smem:[#allocation3]]  ;;  %vm31_vm0 = vcmask 15360  }
  0x10   :  { %v1016_v1 = vld [vmem:[%s2299_s2 + $0x1f8] sm:$0xff]  ;;  %1188 = vmatprep.subr.mxu0 %v81_v0  ;;  %v1015_v5 = vld [vmem:[%s2299_s2 + $0x1f0] sm:$0xff]  ;;  %v1014_v9 = vld [vmem:[%s2299_s2 + $0x1e8] sm:$0xff]  ;;  %s1622_s21 = sld [smem:[#allocation3 + $0x2]] }
  0x11   :  { %v65_v2 = vld [vmem:[%s2299_s2 + $0x78] sm:$0xff]  ;;  %1223 = vmatprep.subr.mxu1 %v1016_v1  ;;  %v64_v6 = vld [vmem:[%s2299_s2 + $0x70] sm:$0xff]  ;;  %v63_v10 = vld [vmem:[%s2299_s2 + $0x68] sm:$0xff]  ;;  %s1667_s24 = sld [smem:[#allocation3 + $0x1]] }
  0x12   :  { %v1000_v3 = vld [vmem:[%s2299_s2 + $0x178] sm:$0xff]  ;;  %1189 = vmatpush3.msra.mxu0 %v65_v2  ;;  %v999_v7 = vld [vmem:[%s2299_s2 + $0x170] sm:$0xff]  ;;  %v998_v11 = vld [vmem:[%s2299_s2 + $0x168] sm:$0xff]  ;;  %s1754_s16 = sld [smem:[#allocation3 + $0x3]] }
  0x13   :  { %1224 = vmatpush3.msra.mxu1 %v1000_v3  ;;  %1190 = vmatprep.subr.mxu0 %v80_v4  ;;  %v78_v12 = vld [vmem:[%s2299_s2 + $0xe0] sm:$0xff]  ;;  %v77_v16 = vld [vmem:[%s2299_s2 + $0xd8] sm:$0xff]  ;;  %v76_v20 = vld [vmem:[%s2299_s2 + $0xd0] sm:$0xff]  ;;  %s1924_s12 = sld [smem:[#allocation3 + $0x4]] }
  0x14   :  { %1225 = vmatprep.subr.mxu1 %v1015_v5  ;;  %1191 = vmatpush3.msra.mxu0 %v64_v6  ;;  %v1013_v13 = vld [vmem:[%s2299_s2 + $0x1e0] sm:$0xff]  ;;  %v1012_v17 = vld [vmem:[%s2299_s2 + $0x1d8] sm:$0xff]  ;;  %v1011_v21 = vld [vmem:[%s2299_s2 + $0x1d0] sm:$0xff]  ;;  %s1932_s15 = sld [smem:[#allocation3 + $0x5]] }
  0x15   :  { %1226 = vmatpush3.msra.mxu1 %v999_v7  ;;  %1192 = vmatprep.subr.mxu0 %v79_v8  ;;  %v62_v14 = vld [vmem:[%s2299_s2 + $0x60] sm:$0xff]  ;;  %v61_v18 = vld [vmem:[%s2299_s2 + $0x58] sm:$0xff]  ;;  %v60_v22 = vld [vmem:[%s2299_s2 + $0x50] sm:$0xff]  ;;  %v42_v44 = vstv %s1614_s17  ;;  %s1987_s23 = sld [smem:[#allocation3 + $0x6]] }
  0x16   :  { %1227 = vmatprep.subr.mxu1 %v1014_v9  ;;  %v997_v15 = vld [vmem:[%s2299_s2 + $0x160] sm:$0xff]  ;;  %1193 = vmatpush3.msra.mxu0 %v63_v10  ;;  %v996_v19 = vld [vmem:[%s2299_s2 + $0x158] sm:$0xff]  ;;  %v995_v23 = vld [vmem:[%s2299_s2 + $0x150] sm:$0xff]  ;;  %v271_v48 = vstv %s1622_s21 }
  0x17   :  { %1228 = vmatpush3.msra.mxu1 %v998_v11  ;;  %1194 = vmatprep.subr.mxu0 %v78_v12  ;;  %v75_v24 = vld [vmem:[%s2299_s2 + $0xc8] sm:$0xff]  ;;  %v74_v28 = vld [vmem:[%s2299_s2 + $0xc0] sm:$0xff]  ;;  %v73_v32 = vld [vmem:[%s2299_s2 + $0xb8] sm:$0xff]  ;;  %v156_v6 = vstv %s1667_s24 }
  0x18   :  { %1229 = vmatprep.subr.mxu1 %v1013_v13  ;;  %1195 = vmatpush3.msra.mxu0 %v62_v14  ;;  %v1010_v25 = vld [vmem:[%s2299_s2 + $0x1c8] sm:$0xff]  ;;  %v1009_v29 = vld [vmem:[%s2299_s2 + $0x1c0] sm:$0xff]  ;;  %v1008_v33 = vld [vmem:[%s2299_s2 + $0x1b8] sm:$0xff] }
  0x19   :  { %1230 = vmatpush3.msra.mxu1 %v997_v15  ;;  %1196 = vmatprep.subr.mxu0 %v77_v16  ;;  %v59_v26 = vld [vmem:[%s2299_s2 + $0x48] sm:$0xff]  ;;  %v58_v30 = vld [vmem:[%s2299_s2 + $0x40] sm:$0xff]  ;;  %v57_v34 = vld [vmem:[%s2299_s2 + $0x38] sm:$0xff] }
  0x1a   :  { %1231 = vmatprep.subr.mxu1 %v1012_v17  ;;  %1197 = vmatpush3.msra.mxu0 %v61_v18  ;;  %v994_v27 = vld [vmem:[%s2299_s2 + $0x148] sm:$0xff]  ;;  %v993_v31 = vld [vmem:[%s2299_s2 + $0x140] sm:$0xff]  ;;  %v992_v35 = vld [vmem:[%s2299_s2 + $0x138] sm:$0xff] }
  0x1b   :  { %1232 = vmatpush3.msra.mxu1 %v996_v19  ;;  %1198 = vmatprep.subr.mxu0 %v76_v20  ;;  %v72_v36 = vld [vmem:[%s2299_s2 + $0xb0] sm:$0xff]  ;;  %v71_v40 = vld [vmem:[%s2299_s2 + $0xa8] sm:$0xff]  ;;  %v70_v45 = vld [vmem:[%s2299_s2 + $0xa0] sm:$0xff] }
  0x1c   :  { %1233 = vmatprep.subr.mxu1 %v1011_v21  ;;  %1199 = vmatpush3.msra.mxu0 %v60_v22  ;;  %v1007_v37 = vld [vmem:[%s2299_s2 + $0x1b0] sm:$0xff]  ;;  %v1006_v41 = vld [vmem:[%s2299_s2 + $0x1a8] sm:$0xff]  ;;  %v1005_v46 = vld [vmem:[%s2299_s2 + $0x1a0] sm:$0xff] }
  0x1d   :  { %1234 = vmatpush3.msra.mxu1 %v995_v23  ;;  %1200 = vmatprep.subr.mxu0 %v75_v24  ;;  %v56_v38 = vld [vmem:[%s2299_s2 + $0x30] sm:$0xff]  ;;  %v55_v42 = vld [vmem:[%s2299_s2 + $0x28] sm:$0xff]  ;;  %v54_v47 = vld [vmem:[%s2299_s2 + $0x20] sm:$0xff] }
  0x1e   :  { %1235 = vmatprep.subr.mxu1 %v1010_v25  ;;  %1201 = vmatpush3.msra.mxu0 %v59_v26  ;;  %v991_v39 = vld [vmem:[%s2299_s2 + $0x130] sm:$0xff]  ;;  %v990_v43 = vld [vmem:[%s2299_s2 + $0x128] sm:$0xff]  ;;  %v989_v49 = vld [vmem:[%s2299_s2 + $0x120] sm:$0xff] }
  0x1f   :  { %1236 = vmatpush3.msra.mxu1 %v994_v27  ;;  %1202 = vmatprep.subr.mxu0 %v74_v28  ;;  %v1685_v50 = vld [vmem:[%s2298_s1] sm:$0xff]  ;;  %v1690_v51 = vld [vmem:[%s2298_s1 + $0x8] sm:$0xff]  ;;  %v69_v52 = vld [vmem:[%s2299_s2 + $0x98] sm:$0xff]  ;;  %v386_v27 = vstv %s1754_s16 }
  0x20   :  { %1237 = vmatprep.subr.mxu1 %v1009_v29  ;;  %1203 = vmatpush3.msra.mxu0 %v58_v30  ;;  %v1004_v53 = vld [vmem:[%s2299_s2 + $0x198] sm:$0xff]  ;;  %v43_v54 = vmul.f32 %v42_v44, %v1685_v50  ;;  %v44_v55 = vmul.f32 %v42_v44, %v1690_v51  ;;  %v273_v58 = vmul.f32 %v271_v48, %v1690_v51  ;;  %v68_v59 = vld [vmem:[%s2299_s2 + $0x90] sm:$0xff]  ;;  %v67_v2 = vld [vmem:[%s2299_s2 + $0x88] sm:$0xff] }
  0x21   :  { %1238 = vmatpush3.msra.mxu1 %v993_v31  ;;  %1204 = vmatprep.subr.mxu0 %v73_v32  ;;  %v53_v56 = vld [vmem:[%s2299_s2 + $0x18] sm:$0xff]  ;;  %v1003_v60 = vld [vmem:[%s2299_s2 + $0x190] sm:$0xff]  ;;  %v1002_v3 = vld [vmem:[%s2299_s2 + $0x188] sm:$0xff]  ;;  %v157_v11 = vmul.f32 %v156_v6, %v1685_v50  ;;  %v158_v14 = vmul.f32 %v156_v6, %v1690_v51  ;;  %v388_v31 = vmul.f32 %v386_v27, %v1690_v51 }
  0x22   :  { %1239 = vmatprep.subr.mxu1 %v1008_v33  ;;  %1205 = vmatpush3.msra.mxu0 %v57_v34  ;;  %v988_v57 = vld [vmem:[%s2299_s2 + $0x118] sm:$0xff]  ;;  %v45_v61 = vmul.f32 1.442695, %v43_v54  ;;  %v47_v62 = vmul.f32 1.442695, %v44_v55  ;;  %v52_v63 = vld [vmem:[%s2299_s2 + $0x10] sm:$0xff]  ;;  %v272_v34 = vmul.f32 %v271_v48, %v1685_v50 }
  0x23   :  { %1240 = vmatpush3.msra.mxu1 %v992_v35  ;;  %1206 = vmatprep.subr.mxu0 %v72_v36  ;;  %v987_v0 = vld [vmem:[%s2299_s2 + $0x110] sm:$0xff]  ;;  %v276_v1 = vmul.f32 1.442695, %v273_v58  ;;  %v51_v4 = vld [vmem:[%s2299_s2 + $0x8] sm:$0xff]  ;;  %v66_v7 = vld [vmem:[%s2299_s2 + $0x80] sm:$0xff] }
  0x24   :  { %1241 = vmatprep.subr.mxu1 %v1007_v37  ;;  %1207 = vmatpush3.msra.mxu0 %v56_v38  ;;  %1435 = vpow2.f32 %v45_v61  ;;  %v986_v5 = vld [vmem:[%s2299_s2 + $0x108] sm:$0xff]  ;;  %v1001_v8 = vld [vmem:[%s2299_s2 + $0x180] sm:$0xff]  ;;  %v1049_v12 = vld [vmem:[%s2299_s2 + $0x2f8] sm:$0xff]  ;;  %v159_v15 = vmul.f32 1.442695, %v157_v11  ;;  %v387_v61 = vmul.f32 %v386_v27, %v1685_v50 }
  0x25   :  { %1242 = vmatpush3.msra.mxu1 %v991_v39  ;;  %1208 = vmatprep.subr.mxu0 %v71_v40  ;;  %1437 = vpow2.f32 %v47_v62  ;;  %v50_v9 = vld [vmem:[%s2299_s2] sm:$0xff]  ;;  %v1082_v13 = vld [vmem:[%s2299_s2 + $0x3f8] sm:$0xff]  ;;  %v161_v16 = vmul.f32 1.442695, %v158_v14  ;;  %v1048_v20 = vld [vmem:[%s2299_s2 + $0x2f0] sm:$0xff] }
  0x26   :  { %1243 = vmatprep.subr.mxu1 %v1006_v41  ;;  %1209 = vmatpush3.msra.mxu0 %v55_v42  ;;  %1439 = vpow2.f32 %v276_v1  ;;  %v985_v10 = vld [vmem:[%s2299_s2 + $0x100] sm:$0xff]  ;;  %v1033_v19 = vld [vmem:[%s2299_s2 + $0x278] sm:$0xff]  ;;  %v1032_v22 = vld [vmem:[%s2299_s2 + $0x270] sm:$0xff]  ;;  %v391_v41 = vmul.f32 1.442695, %v388_v31 }
  0x27   :  { %1244 = vmatpush3.msra.mxu1 %v990_v43  ;;  %1210 = vmatprep.subr.mxu0 %v70_v45  ;;  %1441 = vpow2.f32 %v159_v15  ;;  %v1047_v23 = vld [vmem:[%s2299_s2 + $0x2e8] sm:$0xff]  ;;  %v1046_v25 = vld [vmem:[%s2299_s2 + $0x2e0] sm:$0xff]  ;;  %v1045_v28 = vld [vmem:[%s2299_s2 + $0x2d8] sm:$0xff]  ;;  %v274_v44 = vmul.f32 1.442695, %v272_v34 }
  0x28   :  { %1245 = vmatprep.subr.mxu1 %v1005_v46  ;;  %1211 = vmatpush3.msra.mxu0 %v54_v47  ;;  %1443 = vpow2.f32 %v161_v16  ;;  %v1031_v24 = vld [vmem:[%s2299_s2 + $0x268] sm:$0xff]  ;;  %v1030_v26 = vld [vmem:[%s2299_s2 + $0x260] sm:$0xff]  ;;  %v1029_v29 = vld [vmem:[%s2299_s2 + $0x258] sm:$0xff]  ;;  %v389_v6 = vmul.f32 1.442695, %v387_v61 }
  0x29   :  { %1246 = vmatpush3.msra.mxu1 %v989_v49  ;;  %1212 = vmatprep.subr.mxu0 %v69_v52  ;;  %v1044_v30 = vld [vmem:[%s2299_s2 + $0x2d0] sm:$0xff]  ;;  %v1043_v35 = vld [vmem:[%s2299_s2 + $0x2c8] sm:$0xff]  ;;  %v1066_v37 = vld [vmem:[%s2299_s2 + $0x378] sm:$0xff]  ;;  %1445 = vpow2.f32 %v391_v41 }
  0x2a   :  { %1247 = vmatprep.subr.mxu1 %v1004_v53  ;;  %1213 = vmatpush3.msra.mxu0 %v53_v56  ;;  %v1028_v32 = vld [vmem:[%s2299_s2 + $0x250] sm:$0xff]  ;;  %v1027_v38 = vld [vmem:[%s2299_s2 + $0x248] sm:$0xff]  ;;  %v1042_v40 = vld [vmem:[%s2299_s2 + $0x2c0] sm:$0xff]  ;;  %1447 = vpow2.f32 %v274_v44 }
  0x2b   :  { %1248 = vmatpush3.msra.mxu1 %v988_v57  ;;  %1214 = vmatprep.subr.mxu0 %v68_v59  ;;  %v1081_v39 = vld [vmem:[%s2299_s2 + $0x3f0] sm:$0xff]  ;;  %v1026_v43 = vld [vmem:[%s2299_s2 + $0x240] sm:$0xff]  ;;  %v1080_v45 = vld [vmem:[%s2299_s2 + $0x3e8] sm:$0xff]  ;;  %1449 = vpow2.f32 %v389_v6 }
  0x2c   :  { %1249 = vmatprep.subr.mxu1 %v1003_v60  ;;  %1215 = vmatpush3.msra.mxu0 %v52_v63  ;;  %v1065_v42 = vld [vmem:[%s2299_s2 + $0x370] sm:$0xff]  ;;  %v1041_v46 = vld [vmem:[%s2299_s2 + $0x2b8] sm:$0xff]  ;;  %v1064_v47 = vld [vmem:[%s2299_s2 + $0x368] sm:$0xff] }
  0x2d   :  { %1250 = vmatpush3.msra.mxu1 %v987_v0  ;;  %1216 = vmatprep.subr.mxu0 %v67_v2  ;;  %v1025_v48 = vld [vmem:[%s2299_s2 + $0x238] sm:$0xff]  ;;  %v1079_v49 = vld [vmem:[%s2299_s2 + $0x3e0] sm:$0xff]  ;;  %v1040_v52 = vld [vmem:[%s2299_s2 + $0x2b0] sm:$0xff] }
  0x2e   :  { %1251 = vmatprep.subr.mxu1 %v1002_v3  ;;  %1217 = vmatpush3.msra.mxu0 %v51_v4  ;;  %v1063_v53 = vld [vmem:[%s2299_s2 + $0x360] sm:$0xff]  ;;  %v1024_v54 = vld [vmem:[%s2299_s2 + $0x230] sm:$0xff]  ;;  %v1078_v55 = vld [vmem:[%s2299_s2 + $0x3d8] sm:$0xff] }
  0x2f   :  { %1252 = vmatpush3.msra.mxu1 %v986_v5  ;;  %1218 = vmatprep.subr.mxu0 %v66_v7  ;;  %v1039_v56 = vld [vmem:[%s2299_s2 + $0x2a8] sm:$0xff]  ;;  %v1062_v57 = vld [vmem:[%s2299_s2 + $0x358] sm:$0xff]  ;;  %v1077_v59 = vld [vmem:[%s2299_s2 + $0x3d0] sm:$0xff] }
  0x30   :  { %1253 = vmatprep.subr.mxu1 %v1001_v8  ;;  %1219 = vmatpush3.msra.mxu0 %v50_v9  ;;  %v1023_v58 = vld [vmem:[%s2299_s2 + $0x228] sm:$0xff]  ;;  %v1038_v60 = vld [vmem:[%s2299_s2 + $0x2a0] sm:$0xff]  ;;  %v1061_v62 = vld [vmem:[%s2299_s2 + $0x350] sm:$0xff] }
  0x31   :  { %1254 = vmatpush3.msra.mxu1 %v985_v10  ;;  %1258 = vmatprep.subr.mxu0 %v1049_v12  ;;  %v1436_v17 = vpop.eup %1435  ;;  %v1022_v63 = vld [vmem:[%s2299_s2 + $0x220] sm:$0xff]  ;;  %v1076_v0 = vld [vmem:[%s2299_s2 + $0x3c8] sm:$0xff]  ;;  %v1037_v1 = vld [vmem:[%s2299_s2 + $0x298] sm:$0xff] }
  0x32   :  { %1293 = vmatprep.subr.mxu1 %v1082_v13  ;;  %v1438_v18 = vpop.eup %1437  ;;  %v1060_v2 = vld [vmem:[%s2299_s2 + $0x348] sm:$0xff]  ;;  %v1021_v3 = vld [vmem:[%s2299_s2 + $0x218] sm:$0xff]  ;;  %v1075_v4 = vld [vmem:[%s2299_s2 + $0x3c0] sm:$0xff] }
  0x33   :  { %146 = vmatprep.mubr.f32.mxu0 %v1438_v18  ;;  %v1440_v21 = vpop.eup %1439  ;;  %v1036_v5 = vld [vmem:[%s2299_s2 + $0x290] sm:$0xff]  ;;  %v1059_v7 = vld [vmem:[%s2299_s2 + $0x340] sm:$0xff]  ;;  %v1074_v9 = vld [vmem:[%s2299_s2 + $0x3b8] sm:$0xff] }
  0x34   :  { %147 = vmatmul.mubr.f32.vlgmr.msra.gmra.mxu0 %v1436_v17  ;;  %v1442_v33 = vpop.eup %1441  ;;  %v1020_v8 = vld [vmem:[%s2299_s2 + $0x210] sm:$0xff]  ;;  %v1035_v10 = vld [vmem:[%s2299_s2 + $0x288] sm:$0xff]  ;;  %v1058_v11 = vld [vmem:[%s2299_s2 + $0x338] sm:$0xff] }
  0x35   :  { %1259 = vmatpush3.msra.mxu0 %v1033_v19  ;;  %377 = vmatprep.mubr.f32.mxu0 %v1440_v21  ;;  %v1444_v36 = vpop.eup %1443  ;;  %v1019_v12 = vld [vmem:[%s2299_s2 + $0x208] sm:$0xff]  ;;  %v1073_v13 = vld [vmem:[%s2299_s2 + $0x3b0] sm:$0xff]  ;;  %v1034_v14 = vld [vmem:[%s2299_s2 + $0x280] sm:$0xff] }
  0x36   :  { %1260 = vmatprep.subr.mxu0 %v1048_v20  ;;  %262 = vmatprep.mubr.f32.mxu1 %v1444_v36  ;;  %v1057_v15 = vld [vmem:[%s2299_s2 + $0x330] sm:$0xff]  ;;  %v1018_v16 = vld [vmem:[%s2299_s2 + $0x200] sm:$0xff]  ;;  %v1446_v17 = vpop.eup %1445  ;;  %v1072_v18 = vld [vmem:[%s2299_s2 + $0x3a8] sm:$0xff] }
  0x37   :  { %1261 = vmatpush3.msra.mxu0 %v1032_v22  ;;  %263 = vmatmul.mubr.f32.vlgmr.msra.gmra.mxu1 %v1442_v33  ;;  %v1448_v19 = vpop.eup %1447  ;;  %v1056_v20 = vld [vmem:[%s2299_s2 + $0x328] sm:$0xff]  ;;  %v1071_v21 = vld [vmem:[%s2299_s2 + $0x3a0] sm:$0xff]  ;;  %v1115_v22 = vld [vmem:[%s2299_s2 + $0x4f8] sm:$0xff] }
  0x38   :  { %1262 = vmatprep.subr.mxu0 %v1047_v23  ;;  %1294 = vmatpush3.msra.mxu1 %v1066_v37  ;;  %v1055_v23 = vld [vmem:[%s2299_s2 + $0x320] sm:$0xff]  ;;  %v1054_v27 = vld [vmem:[%s2299_s2 + $0x318] sm:$0xff]  ;;  %v1053_v31 = vld [vmem:[%s2299_s2 + $0x310] sm:$0xff] }
  0x39   :  { %1263 = vmatpush3.msra.mxu0 %v1031_v24  ;;  %1295 = vmatprep.subr.mxu1 %v1081_v39  ;;  %v1099_v24 = vld [vmem:[%s2299_s2 + $0x478] sm:$0xff]  ;;  %v1068_v33 = vld [vmem:[%s2299_s2 + $0x388] sm:$0xff]  ;;  %v1112_v34 = vld [vmem:[%s2299_s2 + $0x4e0] sm:$0xff]  ;;  %v501_v39 = vstv %s1924_s12 }
  0x3a   :  { %1264 = vmatprep.subr.mxu0 %v1046_v25  ;;  %1296 = vmatpush3.msra.mxu1 %v1065_v42  ;;  %v1070_v25 = vld [vmem:[%s2299_s2 + $0x398] sm:$0xff]  ;;  %v1096_v36 = vld [vmem:[%s2299_s2 + $0x460] sm:$0xff]  ;;  %v1450_v42 = vpop.eup %1449 }
  0x3b   :  { %1265 = vmatpush3.msra.mxu0 %v1030_v26  ;;  %1297 = vmatprep.subr.mxu1 %v1080_v45  ;;  %v1114_v26 = vld [vmem:[%s2299_s2 + $0x4f0] sm:$0xff]  ;;  %v1067_v37 = vld [vmem:[%s2299_s2 + $0x380] sm:$0xff]  ;;  %v1095_v41 = vld [vmem:[%s2299_s2 + $0x458] sm:$0xff] }
  0x3c   :  { %1266 = vmatprep.subr.mxu0 %v1045_v28  ;;  %1298 = vmatpush3.msra.mxu1 %v1064_v47  ;;  %v1098_v28 = vld [vmem:[%s2299_s2 + $0x470] sm:$0xff]  ;;  %v1148_v44 = vld [vmem:[%s2299_s2 + $0x5f8] sm:$0xff]  ;;  %v503_v47 = vmul.f32 %v501_v39, %v1690_v51  ;;  %v1145_v61 = vld [vmem:[%s2299_s2 + $0x5e0] sm:$0xff] }
  0x3d   :  { %1267 = vmatpush3.msra.mxu0 %v1029_v29  ;;  %1299 = vmatprep.subr.mxu1 %v1079_v49  ;;  %v1069_v29 = vld [vmem:[%s2299_s2 + $0x390] sm:$0xff]  ;;  %v1132_v45 = vld [vmem:[%s2299_s2 + $0x578] sm:$0xff] }
  0x3e   :  { %1268 = vmatprep.subr.mxu0 %v1044_v30  ;;  %1300 = vmatpush3.msra.mxu1 %v1063_v53  ;;  %v1113_v30 = vld [vmem:[%s2299_s2 + $0x4e8] sm:$0xff]  ;;  %v1094_v49 = vld [vmem:[%s2299_s2 + $0x450] sm:$0xff]  ;;  %v1128_v6 = vld [vmem:[%s2299_s2 + $0x558] sm:$0xff] }
  0x3f   :  { %1269 = vmatpush3.msra.mxu0 %v1028_v32  ;;  %1301 = vmatprep.subr.mxu1 %v1078_v55  ;;  %v1097_v32 = vld [vmem:[%s2299_s2 + $0x468] sm:$0xff]  ;;  %v1131_v53 = vld [vmem:[%s2299_s2 + $0x570] sm:$0xff]  ;;  %v502_v55 = vmul.f32 %v501_v39, %v1685_v50 }
  0x40   :  { %1270 = vmatprep.subr.mxu0 %v1043_v35  ;;  %1302 = vmatpush3.msra.mxu1 %v1062_v57  ;;  %v1052_v35 = vld [vmem:[%s2299_s2 + $0x308] sm:$0xff] }
  0x41   :  { %1271 = vmatpush3.msra.mxu0 %v1027_v38  ;;  %1303 = vmatprep.subr.mxu1 %v1077_v59  ;;  %v1111_v38 = vld [vmem:[%s2299_s2 + $0x4d8] sm:$0xff]  ;;  %v1093_v57 = vld [vmem:[%s2299_s2 + $0x448] sm:$0xff]  ;;  %v1108_v59 = vld [vmem:[%s2299_s2 + $0x4c0] sm:$0xff] }
  0x42   :  { %1272 = vmatprep.subr.mxu0 %v1042_v40  ;;  %1304 = vmatpush3.msra.mxu1 %v1061_v62  ;;  %v1051_v40 = vld [vmem:[%s2299_s2 + $0x300] sm:$0xff] }
  0x43   :  { %1273 = vmatpush3.msra.mxu0 %v1026_v43  ;;  %1305 = vmatprep.subr.mxu1 %v1076_v0  ;;  %v616_v43 = vstv %s1932_s15  ;;  %v1092_v62 = vld [vmem:[%s2299_s2 + $0x440] sm:$0xff] }
  0x44   :  { %1274 = vmatprep.subr.mxu0 %v1041_v46  ;;  %1306 = vmatpush3.msra.mxu1 %v1060_v2  ;;  %v1110_v46 = vld [vmem:[%s2299_s2 + $0x4d0] sm:$0xff]  ;;  %v1129_v0 = vld [vmem:[%s2299_s2 + $0x560] sm:$0xff]  ;;  %v504_v2 = vmul.f32 1.442695, %v502_v55 }
  0x45   :  { %1275 = vmatpush3.msra.mxu0 %v1025_v48  ;;  %1307 = vmatprep.subr.mxu1 %v1075_v4  ;;  %v1147_v48 = vld [vmem:[%s2299_s2 + $0x5f0] sm:$0xff]  ;;  %v1091_v4 = vld [vmem:[%s2299_s2 + $0x438] sm:$0xff]  ;;  %v1117_v55 = vld [vmem:[%s2299_s2 + $0x500] sm:$0xff] }
  0x46   :  { %1276 = vmatprep.subr.mxu0 %v1040_v52  ;;  %1308 = vmatpush3.msra.mxu1 %v1059_v7  ;;  %v618_v52 = vmul.f32 %v616_v43, %v1690_v51  ;;  %v1106_v7 = vld [vmem:[%s2299_s2 + $0x4b0] sm:$0xff] }
  0x47   :  { %1277 = vmatpush3.msra.mxu0 %v1024_v54  ;;  %1309 = vmatprep.subr.mxu1 %v1074_v9  ;;  %v1109_v54 = vld [vmem:[%s2299_s2 + $0x4c8] sm:$0xff]  ;;  %v1090_v9 = vld [vmem:[%s2299_s2 + $0x430] sm:$0xff] }
  0x48   :  { %1278 = vmatprep.subr.mxu0 %v1039_v56  ;;  %1310 = vmatpush3.msra.mxu1 %v1058_v11  ;;  %v1146_v56 = vld [vmem:[%s2299_s2 + $0x5e8] sm:$0xff]  ;;  %v1127_v11 = vld [vmem:[%s2299_s2 + $0x550] sm:$0xff] }
  0x49   :  { %1279 = vmatpush3.msra.mxu0 %v1023_v58  ;;  %1311 = vmatprep.subr.mxu1 %v1073_v13  ;;  %v1130_v58 = vld [vmem:[%s2299_s2 + $0x568] sm:$0xff] }
  0x4a   :  { %1280 = vmatprep.subr.mxu0 %v1038_v60  ;;  %1312 = vmatpush3.msra.mxu1 %v1057_v15  ;;  %v506_v60 = vmul.f32 1.442695, %v503_v47  ;;  %v1089_v15 = vld [vmem:[%s2299_s2 + $0x428] sm:$0xff] }
  0x4b   :  { %1281 = vmatpush3.msra.mxu0 %v1022_v63  ;;  %1313 = vmatprep.subr.mxu1 %v1072_v18  ;;  %v621_v63 = vmul.f32 1.442695, %v618_v52  ;;  %v1088_v18 = vld [vmem:[%s2299_s2 + $0x420] sm:$0xff]  ;;  %v1134_v47 = vld [vmem:[%s2299_s2 + $0x588] sm:$0xff]  ;;  %v1164_v52 = vld [vmem:[%s2299_s2 + $0x670] sm:$0xff] }
  0x4c   :  { %1282 = vmatprep.subr.mxu0 %v1037_v1  ;;  %492 = vmatprep.mubr.f32.mxu1 %v1446_v17  ;;  %v1107_v1 = vld [vmem:[%s2299_s2 + $0x4b8] sm:$0xff]  ;;  %1451 = vpow2.f32 %v506_v60  ;;  %v1141_v17 = vld [vmem:[%s2299_s2 + $0x5c0] sm:$0xff] }
  0x4d   :  { %1283 = vmatpush3.msra.mxu0 %v1021_v3  ;;  %1314 = vmatpush3.msra.mxu1 %v1056_v20  ;;  %v1144_v3 = vld [vmem:[%s2299_s2 + $0x5d8] sm:$0xff]  ;;  %1453 = vpow2.f32 %v621_v63  ;;  %v1125_v20 = vld [vmem:[%s2299_s2 + $0x540] sm:$0xff] }
  0x4e   :  { %1284 = vmatprep.subr.mxu0 %v1036_v5  ;;  %1315 = vmatprep.subr.mxu1 %v1071_v21  ;;  %v731_v5 = vstv %s1987_s23  ;;  %1455 = vpow2.f32 %v504_v2  ;;  %v1103_v21 = vld [vmem:[%s2299_s2 + $0x498] sm:$0xff]  ;;  %v1160_v2 = vld [vmem:[%s2299_s2 + $0x650] sm:$0xff] }
  0x4f   :  { %1285 = vmatpush3.msra.mxu0 %v1020_v8  ;;  %1316 = vmatpush3.msra.mxu1 %v1055_v23  ;;  %v1143_v8 = vld [vmem:[%s2299_s2 + $0x5d0] sm:$0xff]  ;;  %v733_v13 = vmul.f32 %v731_v5, %v1690_v51  ;;  %v1104_v51 = vld [vmem:[%s2299_s2 + $0x4a0] sm:$0xff]  ;;  %v1140_v23 = vld [vmem:[%s2299_s2 + $0x5b8] sm:$0xff] }
  0x50   :  { %1286 = vmatprep.subr.mxu0 %v1035_v10  ;;  %1317 = vmatprep.subr.mxu1 %v1070_v25  ;;  %v617_v10 = vmul.f32 %v616_v43, %v1685_v50  ;;  %v1124_v25 = vld [vmem:[%s2299_s2 + $0x538] sm:$0xff]  ;;  %v1135_v43 = vld [vmem:[%s2299_s2 + $0x590] sm:$0xff] }
  0x51   :  { %1287 = vmatpush3.msra.mxu0 %v1019_v12  ;;  %1318 = vmatpush3.msra.mxu1 %v1054_v27  ;;  %v1105_v12 = vld [vmem:[%s2299_s2 + $0x4a8] sm:$0xff]  ;;  %v1139_v27 = vld [vmem:[%s2299_s2 + $0x5b0] sm:$0xff]  ;;  %v1161_v63 = vld [vmem:[%s2299_s2 + $0x658] sm:$0xff] }
  0x52   :  { %1288 = vmatprep.subr.mxu0 %v1034_v14  ;;  %1319 = vmatprep.subr.mxu1 %v1069_v29  ;;  %v1142_v14 = vld [vmem:[%s2299_s2 + $0x5c8] sm:$0xff]  ;;  %v1123_v29 = vld [vmem:[%s2299_s2 + $0x530] sm:$0xff] }
  0x53   :  { %1289 = vmatpush3.msra.mxu0 %v1018_v16  ;;  %1320 = vmatpush3.msra.mxu1 %v1053_v31  ;;  %v1126_v16 = vld [vmem:[%s2299_s2 + $0x548] sm:$0xff] }
  0x54   :  { %378 = vmatmul.mubr.f32.vlgmr.msra.gmra.mxu0 %v1448_v19  ;;  %1328 = vmatprep.subr.mxu0 %v1115_v22  ;;  %v619_v19 = vmul.f32 1.442695, %v617_v10  ;;  %v736_v22 = vmul.f32 1.442695, %v733_v13  ;;  %v1138_v31 = vld [vmem:[%s2299_s2 + $0x5a8] sm:$0xff]  ;;  %v1156_v10 = vld [vmem:[%s2299_s2 + $0x630] sm:$0xff] }
  0x55   :  { %1329 = vmatpush3.msra.mxu0 %v1099_v24  ;;  %1321 = vmatprep.subr.mxu1 %v1068_v33  ;;  %v1087_v24 = vld [vmem:[%s2299_s2 + $0x418] sm:$0xff]  ;;  %v1122_v33 = vld [vmem:[%s2299_s2 + $0x528] sm:$0xff]  ;;  %v1170_v13 = vld [vmem:[%s2299_s2 + $0x6a0] sm:$0xff] }
  0x56   :  { %1330 = vmatprep.subr.mxu0 %v1114_v26  ;;  %1322 = vmatpush3.msra.mxu1 %v1052_v35  ;;  %v1102_v26 = vld [vmem:[%s2299_s2 + $0x490] sm:$0xff]  ;;  %1457 = vpow2.f32 %v619_v19  ;;  %v1137_v35 = vld [vmem:[%s2299_s2 + $0x5a0] sm:$0xff]  ;;  %v1151_v19 = vld [vmem:[%s2299_s2 + $0x608] sm:$0xff] }
  0x57   :  { %1331 = vmatpush3.msra.mxu0 %v1098_v28  ;;  %1323 = vmatprep.subr.mxu1 %v1067_v37  ;;  %v1086_v28 = vld [vmem:[%s2299_s2 + $0x410] sm:$0xff]  ;;  %1459 = vpow2.f32 %v736_v22 }
  0x58   :  { %1332 = vmatprep.subr.mxu0 %v1113_v30  ;;  %1324 = vmatpush3.msra.mxu1 %v1051_v40  ;;  %v1101_v30 = vld [vmem:[%s2299_s2 + $0x488] sm:$0xff]  ;;  %v1136_v40 = vld [vmem:[%s2299_s2 + $0x598] sm:$0xff] }
  0x59   :  { %1333 = vmatpush3.msra.mxu0 %v1097_v32  ;;  %493 = vmatmul.mubr.f32.vlgmr.msra.gmra.mxu1 %v1450_v42  ;;  %v1085_v32 = vld [vmem:[%s2299_s2 + $0x408] sm:$0xff]  ;;  %v1452_v37 = vpop.eup %1451  ;;  %v1120_v42 = vld [vmem:[%s2299_s2 + $0x518] sm:$0xff] }
  0x5a   :  { %1334 = vmatprep.subr.mxu0 %v1112_v34  ;;  %1363 = vmatprep.subr.mxu1 %v1148_v44  ;;  %v1100_v34 = vld [vmem:[%s2299_s2 + $0x480] sm:$0xff]  ;;  %v1454_v39 = vpop.eup %1453  ;;  %v1181_v44 = vld [vmem:[%s2299_s2 + $0x6f8] sm:$0xff] }
  0x5b   :  { %1335 = vmatpush3.msra.mxu0 %v1096_v36  ;;  %1364 = vmatpush3.msra.mxu1 %v1132_v45  ;;  %v1084_v36 = vld [vmem:[%s2299_s2 + $0x400] sm:$0xff]  ;;  %v1119_v45 = vld [vmem:[%s2299_s2 + $0x510] sm:$0xff] }
  0x5c   :  { %1336 = vmatprep.subr.mxu0 %v1111_v38  ;;  %1365 = vmatprep.subr.mxu1 %v1147_v48  ;;  %v1121_v38 = vld [vmem:[%s2299_s2 + $0x520] sm:$0xff]  ;;  %v1180_v48 = vld [vmem:[%s2299_s2 + $0x6f0] sm:$0xff] }
  0x5d   :  { %1337 = vmatpush3.msra.mxu0 %v1095_v41  ;;  %1366 = vmatpush3.msra.mxu1 %v1131_v53  ;;  %v1456_v41 = vpop.eup %1455  ;;  %v1133_v53 = vld [vmem:[%s2299_s2 + $0x580] sm:$0xff] }
  0x5e   :  { %1338 = vmatprep.subr.mxu0 %v1110_v46  ;;  %1367 = vmatprep.subr.mxu1 %v1146_v56  ;;  %v1165_v46 = vld [vmem:[%s2299_s2 + $0x678] sm:$0xff]  ;;  %v1163_v56 = vld [vmem:[%s2299_s2 + $0x668] sm:$0xff] }
  0x5f   :  { %1339 = vmatpush3.msra.mxu0 %v1094_v49  ;;  %1368 = vmatpush3.msra.mxu1 %v1130_v58  ;;  %v1118_v49 = vld [vmem:[%s2299_s2 + $0x508] sm:$0xff]  ;;  %v1178_v58 = vld [vmem:[%s2299_s2 + $0x6e0] sm:$0xff] }
  0x60   :  { %1340 = vmatprep.subr.mxu0 %v1109_v54  ;;  %1369 = vmatprep.subr.mxu1 %v1145_v61  ;;  %v1179_v54 = vld [vmem:[%s2299_s2 + $0x6e8] sm:$0xff]  ;;  %v1162_v61 = vld [vmem:[%s2299_s2 + $0x660] sm:$0xff] }
  0x61   :  { %1341 = vmatpush3.msra.mxu0 %v1093_v57  ;;  %1370 = vmatpush3.msra.mxu1 %v1129_v0  ;;  %v1176_v0 = vld [vmem:[%s2299_s2 + $0x6d0] sm:$0xff] }
  0x62   :  { %1342 = vmatprep.subr.mxu0 %v1108_v59  ;;  %1371 = vmatprep.subr.mxu1 %v1144_v3  ;;  %v1506_v59 = vmov 0.0   ;;  %v1175_v3 = vld [vmem:[%s2299_s2 + $0x6c8] sm:$0xff] }
  0x63   :  { %1343 = vmatpush3.msra.mxu0 %v1092_v62  ;;  %1372 = vmatpush3.msra.mxu1 %v1128_v6  ;;  %v1458_v57 = vpop.eup %1457  ;;  %32 = vst.msk [vmem:[#allocation2] sm:$0xff] %vm31_vm0, %v1506_v59  ;;  %33 = vst.msk [vmem:[#allocation2 + $0x8] sm:$0xff] %vm31_vm0, %v1506_v59  ;;  %v1177_v62 = vld [vmem:[%s2299_s2 + $0x6d8] sm:$0xff]  ;;  %v1158_v6 = vld [vmem:[%s2299_s2 + $0x640] sm:$0xff] }
  0x64   :  { %1344 = vmatprep.subr.mxu0 %v1107_v1  ;;  %1373 = vmatprep.subr.mxu1 %v1143_v8  ;;  %34 = vst.msk [vmem:[#allocation2 + $0x10] sm:$0xff] %vm31_vm0, %v1506_v59  ;;  %35 = vst.msk [vmem:[#allocation2 + $0x18] sm:$0xff] %vm31_vm0, %v1506_v59  ;;  %v1460_v60 = vpop.eup %1459  ;;  %v732_v1 = vmul.f32 %v731_v5, %v1685_v50  ;;  %v1174_v50 = vld [vmem:[%s2299_s2 + $0x6c0] sm:$0xff]  ;;  %v1157_v8 = vld [vmem:[%s2299_s2 + $0x638] sm:$0xff] }
  0x65   :  { %1345 = vmatpush3.msra.mxu0 %v1091_v4  ;;  %1374 = vmatpush3.msra.mxu1 %v1127_v11  ;;  %36 = vst.msk [vmem:[#allocation2 + $0x20] sm:$0xff] %vm31_vm0, %v1506_v59  ;;  %37 = vst.msk [vmem:[#allocation2 + $0x28] sm:$0xff] %vm31_vm0, %v1506_v59  ;;  %v1159_v4 = vld [vmem:[%s2299_s2 + $0x648] sm:$0xff] }
  0x66   :  { %1346 = vmatprep.subr.mxu0 %v1106_v7  ;;  %1375 = vmatprep.subr.mxu1 %v1142_v14  ;;  %38 = vst.msk [vmem:[#allocation2 + $0x30] sm:$0xff] %vm31_vm0, %v1506_v59  ;;  %v734_v5 = vmul.f32 1.442695, %v732_v1  ;;  %v1173_v7 = vld [vmem:[%s2299_s2 + $0x6b8] sm:$0xff]  ;;  %v1171_v11 = vld [vmem:[%s2299_s2 + $0x6a8] sm:$0xff]  ;;  %v1154_v14 = vld [vmem:[%s2299_s2 + $0x620] sm:$0xff] }
  0x67   :  { %1347 = vmatpush3.msra.mxu0 %v1090_v9  ;;  %1376 = vmatpush3.msra.mxu1 %v1126_v16  ;;  %v1172_v9 = vld [vmem:[%s2299_s2 + $0x6b0] sm:$0xff]  ;;  %v1153_v16 = vld [vmem:[%s2299_s2 + $0x618] sm:$0xff] }
  0x68   :  { %1348 = vmatprep.subr.mxu0 %v1105_v12  ;;  %1377 = vmatprep.subr.mxu1 %v1141_v17  ;;  %1461 = vpow2.f32 %v734_v5  ;;  %v1155_v12 = vld [vmem:[%s2299_s2 + $0x628] sm:$0xff]  ;;  %v1152_v17 = vld [vmem:[%s2299_s2 + $0x610] sm:$0xff] }
  0x69   :  { %1349 = vmatpush3.msra.mxu0 %v1089_v15  ;;  %1378 = vmatpush3.msra.mxu1 %v1125_v20  ;;  %v1169_v15 = vld [vmem:[%s2299_s2 + $0x698] sm:$0xff]  ;;  %v1166_v20 = vld [vmem:[%s2299_s2 + $0x680] sm:$0xff] }
  0x6a   :  { %1350 = vmatprep.subr.mxu0 %v1104_v51  ;;  %1379 = vmatprep.subr.mxu1 %v1140_v23  ;;  %v1168_v51 = vld [vmem:[%s2299_s2 + $0x690] sm:$0xff] }
  0x6b   :  { %1351 = vmatpush3.msra.mxu0 %v1088_v18  ;;  %1380 = vmatpush3.msra.mxu1 %v1124_v25  ;;  %v1167_v18 = vld [vmem:[%s2299_s2 + $0x688] sm:$0xff] }
  0x6c   :  { %1352 = vmatprep.subr.mxu0 %v1103_v21  ;;  %1381 = vmatprep.subr.mxu1 %v1139_v27  ;;  %v1150_v21 = vld [vmem:[%s2299_s2 + $0x600] sm:$0xff] }
  0x6d   :  { %1353 = vmatpush3.msra.mxu0 %v1087_v24  ;;  %1382 = vmatpush3.msra.mxu1 %v1123_v29  ;;  %v49_v24 = vld [vmem:[#allocation2] sm:$0xff] }
  0x6e   :  { %1354 = vmatprep.subr.mxu0 %v1102_v26  ;;  %1383 = vmatprep.subr.mxu1 %v1138_v31 }
  0x6f   :  { %1355 = vmatpush3.msra.mxu0 %v1086_v28  ;;  %1384 = vmatpush3.msra.mxu1 %v1122_v33 }
  0x70   :  { %1356 = vmatprep.subr.mxu0 %v1101_v30  ;;  %1385 = vmatprep.subr.mxu1 %v1137_v35  ;;  %v164_v30 = vld [vmem:[#allocation2 + $0x8] sm:$0xff] }
  0x71   :  { %1357 = vmatpush3.msra.mxu0 %v1085_v32  ;;  %1386 = vmatpush3.msra.mxu1 %v1121_v38 }
  0x72   :  { %1358 = vmatprep.subr.mxu0 %v1100_v34  ;;  %607 = vmatprep.mubr.f32.mxu0 %v1452_v37 }
  0x73   :  { %1359 = vmatpush3.msra.mxu0 %v1084_v36  ;;  %1387 = vmatprep.subr.mxu1 %v1136_v40 }
  0x74   :  { %722 = vmatprep.mubr.f32.mxu1 %v1454_v39  ;;  %1388 = vmatpush3.msra.mxu1 %v1120_v42 }
  0x75   :  { %608 = vmatmul.mubr.f32.vlgmr.msra.gmra.mxu0 %v1456_v41  ;;  %1389 = vmatprep.subr.mxu1 %v1135_v43  ;;  %v1462_v22 = vpop.eup %1461  ;;  %v279_v41 = vld [vmem:[#allocation2 + $0x10] sm:$0xff] }
  0x76   :  { %1398 = vmatprep.subr.mxu0 %v1181_v44  ;;  %1390 = vmatpush3.msra.mxu1 %v1119_v45 }
  0x77   :  { %1399 = vmatpush3.msra.mxu0 %v1165_v46  ;;  %1391 = vmatprep.subr.mxu1 %v1134_v47 }
  0x78   :  { %1400 = vmatprep.subr.mxu0 %v1180_v48  ;;  %1392 = vmatpush3.msra.mxu1 %v1118_v49  ;;  %v394_v48 = vld [vmem:[#allocation2 + $0x18] sm:$0xff] }
  0x79   :  { %1401 = vmatpush3.msra.mxu0 %v1164_v52  ;;  %1393 = vmatprep.subr.mxu1 %v1133_v53 }
  0x7a   :  { %1402 = vmatprep.subr.mxu0 %v1179_v54  ;;  %1394 = vmatpush3.msra.mxu1 %v1117_v55 }
  0x7b   :  { %1403 = vmatpush3.msra.mxu0 %v1163_v56  ;;  %723 = vmatmul.mubr.f32.vlgmr.msra.gmra.mxu1 %v1458_v57 }
  0x7c   :  { %1404 = vmatprep.subr.mxu0 %v1178_v58  ;;  %837 = vmatprep.mubr.f32.mxu0 %v1460_v60 }
  0x7d   :  { %1405 = vmatpush3.msra.mxu0 %v1162_v61 }
  0x7e   :  { %1406 = vmatprep.subr.mxu0 %v1177_v62 }
  0x7f   :  { %1407 = vmatpush3.msra.mxu0 %v1161_v63 }
  0x80   :  { %1408 = vmatprep.subr.mxu0 %v1176_v0 }
  0x81   :  { %1409 = vmatpush3.msra.mxu0 %v1160_v2 }
  0x82   :  { %1410 = vmatprep.subr.mxu0 %v1175_v3 }
  0x83   :  { %1411 = vmatpush3.msra.mxu0 %v1159_v4 }
  0x84   :  { %1412 = vmatprep.subr.mxu0 %v1174_v50 }
  0x85   :  { %1413 = vmatpush3.msra.mxu0 %v1158_v6 }
  0x86   :  { %1414 = vmatprep.subr.mxu0 %v1173_v7 }
  0x87   :  { %1415 = vmatpush3.msra.mxu0 %v1157_v8 }
  0x88   :  { %1416 = vmatprep.subr.mxu0 %v1172_v9 }
  0x89   :  { %1417 = vmatpush3.msra.mxu0 %v1156_v10 }
  0x8a   :  { %1418 = vmatprep.subr.mxu0 %v1171_v11  ;;  %v509_v11 = vld [vmem:[#allocation2 + $0x20] sm:$0xff] }
  0x8b   :  { %1419 = vmatpush3.msra.mxu0 %v1155_v12 }
  0x8c   :  { %1420 = vmatprep.subr.mxu0 %v1170_v13 }
  0x8d   :  { %1421 = vmatpush3.msra.mxu0 %v1154_v14 }
  0x8e   :  { %1422 = vmatprep.subr.mxu0 %v1169_v15 }
  0x8f   :  { %1423 = vmatpush3.msra.mxu0 %v1153_v16 }
  0x90   :  { %1424 = vmatprep.subr.mxu0 %v1168_v51 }
  0x91   :  { %1425 = vmatpush3.msra.mxu0 %v1152_v17 }
  0x92   :  { %1426 = vmatprep.subr.mxu0 %v1167_v18 }
  0x93   :  { %1427 = vmatpush3.msra.mxu0 %v1151_v19 }
  0x94   :  { %1428 = vmatprep.subr.mxu0 %v1166_v20  ;;  %v624_v20 = vld [vmem:[#allocation2 + $0x28] sm:$0xff] }
  0x95   :  { %1429 = vmatpush3.msra.mxu0 %v1150_v21 }
  0x96   :  { %838 = vmatmul.mubr.f32.vlgmr.msra.gmra.mxu0 %v1462_v22 }
  0xf4   :  { %v1220_v23 = vpop.f32.mrf.mxu0 }
  0xf6   :  { %v1221_v25 = vpop.f32.mrf.mxu0 }
  0xf7   :  { %v1222_v26 = vadd.f32 %v1221_v25, %v1220_v23  ;;  %v1255_v28 = vpop.f32.mrf.mxu1 }
  0xf9   :  { %v152_v27 = vadd.f32 %v1222_v26, %v49_v24  ;;  %v1256_v31 = vpop.f32.mrf.mxu1 }
  0xfa   :  { %v1257_v33 = vadd.f32 %v1256_v31, %v1255_v28 }
  0xfb   :  { %154 = vst.msk [vmem:[#allocation2] sm:$0xff] %vm31_vm0, %v152_v27 }
  0xfc   :  { %v268_v35 = vadd.f32 %v1257_v33, %v164_v30 }
  0xfe   :  { %269 = vst.msk [vmem:[#allocation2 + $0x8] sm:$0xff] %vm31_vm0, %v268_v35 }
 0x102   :  { %v848_v29 = vld [vmem:[#allocation2] sm:$0xff] }
 0x103   :  { %v849_v32 = vsub.f32 0.0, %v848_v29 }
 0x105   :  { %v850_v34 = vmul.f32 1.442695, %v849_v32  ;;  %v858_v36 = vld [vmem:[#allocation2 + $0x8] sm:$0xff] }
 0x106   :  { %v859_v37 = vmul.f32 1.442695, %v858_v36 }
 0x107   :  { %1463 = vpow2.f32 %v850_v34 }
 0x108   :  { %1465 = vpow2.f32 %v859_v37 }
 0x114   :  { %v1464_v38 = vpop.eup %1463  ;;  %v1290_v40 = vpop.f32.mrf.mxu0 }
 0x115   :  { %v852_v39 = vadd.f32 1.0, %v1464_v38  ;;  %v1466_v45 = vpop.eup %1465 }
 0x116   :  { %v1291_v42 = vpop.f32.mrf.mxu0  ;;  %v862_v46 = vadd.f32 1.0, %v1466_v45  ;;  %v865_v57 = vmul.f32 -0.5, %v1466_v45  ;;  %v868_v61 = vand.u32 2147483647, %v1466_v45  ;;  %vm861_vm2 = vcmp.lt.f32.partialorder %v1466_v45, 1000.0 }
 0x117   :  { %1467 = vrcp.f32 %v852_v39  ;;  %v1292_v43 = vadd.f32 %v1291_v42, %v1290_v40 }
 0x118   :  { %1469 = vlog2.f32 %v862_v46  ;;  %v866_v60 = vadd.f32 1.0, %v865_v57  ;;  %vm869_vm1 = vcmp.lt.f32.partialorder %v868_v61, 0.0004427343 }
 0x119   :  { %v383_v44 = vadd.f32 %v1292_v43, %v279_v41  ;;  %v1325_v47 = vpop.f32.mrf.mxu1 }
 0x11a   :  { %v867_v62 = vmul.f32 %v1466_v45, %v866_v60 }
 0x11b   :  { %384 = vst.msk [vmem:[#allocation2 + $0x10] sm:$0xff] %vm31_vm0, %v383_v44  ;;  %v1326_v49 = vpop.f32.mrf.mxu1 }
 0x11c   :  { %v1327_v53 = vadd.f32 %v1326_v49, %v1325_v47 }
 0x11e   :  { %v498_v58 = vadd.f32 %v1327_v53, %v394_v48 }
 0x120   :  { %499 = vst.msk [vmem:[#allocation2 + $0x18] sm:$0xff] %vm31_vm0, %v498_v58 }
 0x122   :  { %v878_v52 = vld [vmem:[#allocation2 + $0x10] sm:$0xff] }
 0x123   :  { %v879_v55 = vmul.f32 1.442695, %v878_v52 }
 0x124   :  { %v1468_v54 = vpop.eup %1467 }
 0x125   :  { %v855_v56 = vmax.f32 %v1468_v54, 1e-05  ;;  %1471 = vpow2.f32 %v879_v55  ;;  %v1470_v63 = vpop.eup %1469  ;;  %v739_v55 = vld [vmem:[#allocation2 + $0x30] sm:$0xff] }
 0x126   :  { %v864_v1 = vmul.f32 0.6931472, %v1470_v63 }
 0x127   :  { %v856_v59 = vmin.f32 %v855_v56, 0.99999  ;;  %v898_v0 = vld [vmem:[#allocation2 + $0x18] sm:$0xff] }
 0x128   :  { %v899_v2 = vmul.f32 1.442695, %v898_v0  ;;  %v870_v3 = vsel %vm869_vm1, %v867_v62, %v864_v1 }
 0x129   :  { %857 = vst.msk [vmem:[%s2300_s3] sm:$0xff] %vm31_vm0, %v856_v59  ;;  %v871_v4 = vsel %vm861_vm2, %v870_v3, %v858_v36 }
 0x12a   :  { %1473 = vpow2.f32 %v899_v2  ;;  %v872_v5 = vmul.f32 0.9, %v871_v4 }
 0x12c   :  { %v873_v7 = vadd.f32 0.01, %v872_v5 }
 0x12e   :  { %v874_v8 = vmax.f32 %v873_v7, 1e-05 }
 0x130   :  { %v875_v9 = vmin.f32 %v874_v8, 100000.0 }
 0x132   :  { %v1472_v50 = vpop.eup %1471  ;;  %1182 = vst.msk [vmem:[%s2300_s3 + $0x8] sm:$0xff] %vm31_vm0, %v875_v9 }
 0x133   :  { %v882_v6 = vadd.f32 1.0, %v1472_v50  ;;  %v885_v13 = vmul.f32 -0.5, %v1472_v50  ;;  %v888_v19 = vand.u32 2147483647, %v1472_v50  ;;  %vm881_vm4 = vcmp.lt.f32.partialorder %v1472_v50, 1000.0 }
 0x135   :  { %1475 = vlog2.f32 %v882_v6  ;;  %v1360_v10 = vpop.f32.mrf.mxu0  ;;  %v886_v17 = vadd.f32 1.0, %v885_v13  ;;  %vm889_vm3 = vcmp.lt.f32.partialorder %v888_v19, 0.0004427343 }
 0x137   :  { %v1361_v12 = vpop.f32.mrf.mxu0  ;;  %v1474_v15 = vpop.eup %1473  ;;  %v887_v25 = vmul.f32 %v1472_v50, %v886_v17 }
 0x138   :  { %v1362_v14 = vadd.f32 %v1361_v12, %v1360_v10  ;;  %v902_v51 = vadd.f32 1.0, %v1474_v15  ;;  %v905_v26 = vmul.f32 -0.5, %v1474_v15  ;;  %v908_v35 = vand.u32 2147483647, %v1474_v15 }
 0x139   :  { %vm901_vm6 = vcmp.lt.f32.partialorder %v1474_v15, 1000.0 }
 0x13a   :  { %v613_v16 = vadd.f32 %v1362_v14, %v509_v11  ;;  %1477 = vlog2.f32 %v902_v51  ;;  %v906_v33 = vadd.f32 1.0, %v905_v26  ;;  %vm909_vm5 = vcmp.lt.f32.partialorder %v908_v35, 0.0004427343 }
 0x13b   :  { %v1395_v18 = vpop.f32.mrf.mxu1 }
 0x13c   :  { %614 = vst.msk [vmem:[#allocation2 + $0x20] sm:$0xff] %vm31_vm0, %v613_v16  ;;  %v907_v37 = vmul.f32 %v1474_v15, %v906_v33 }
 0x13d   :  { %v1396_v21 = vpop.f32.mrf.mxu1 }
 0x13e   :  { %v1397_v23 = vadd.f32 %v1396_v21, %v1395_v18 }
 0x140   :  { %v728_v27 = vadd.f32 %v1397_v23, %v624_v20 }
 0x142   :  { %v1476_v22 = vpop.eup %1475  ;;  %729 = vst.msk [vmem:[#allocation2 + $0x28] sm:$0xff] %vm31_vm0, %v728_v27 }
 0x143   :  { %v884_v24 = vmul.f32 0.6931472, %v1476_v22  ;;  %v918_v30 = vld [vmem:[#allocation2 + $0x20] sm:$0xff] }
 0x144   :  { %v919_v32 = vmul.f32 1.442695, %v918_v30 }
 0x145   :  { %v890_v28 = vsel %vm889_vm3, %v887_v25, %v884_v24 }
 0x146   :  { %v891_v29 = vsel %vm881_vm4, %v890_v28, %v878_v52  ;;  %1479 = vpow2.f32 %v919_v32 }
 0x147   :  { %v892_v31 = vmul.f32 0.9, %v891_v29  ;;  %v1478_v38 = vpop.eup %1477 }
 0x148   :  { %v904_v41 = vmul.f32 0.6931472, %v1478_v38 }
 0x149   :  { %v893_v34 = vadd.f32 0.01, %v892_v31  ;;  %v938_v40 = vld [vmem:[#allocation2 + $0x28] sm:$0xff] }
 0x14a   :  { %v939_v42 = vmul.f32 1.442695, %v938_v40  ;;  %v910_v43 = vsel %vm909_vm5, %v907_v37, %v904_v41 }
 0x14b   :  { %v894_v36 = vmax.f32 %v893_v34, 1e-05  ;;  %v911_v44 = vsel %vm901_vm6, %v910_v43, %v898_v0 }
 0x14c   :  { %1481 = vpow2.f32 %v939_v42  ;;  %v912_v45 = vmul.f32 0.9, %v911_v44 }
 0x14d   :  { %v895_v39 = vmin.f32 %v894_v36, 100000.0 }
 0x14e   :  { %v913_v46 = vadd.f32 0.01, %v912_v45 }
 0x14f   :  { %1183 = vst.msk [vmem:[%s2300_s3 + $0x10] sm:$0xff] %vm31_vm0, %v895_v39 }
 0x150   :  { %v914_v48 = vmax.f32 %v913_v46, 1e-05 }
 0x152   :  { %v915_v52 = vmin.f32 %v914_v48, 100000.0 }
 0x153   :  { %v1480_v47 = vpop.eup %1479 }
 0x154   :  { %v922_v49 = vadd.f32 1.0, %v1480_v47  ;;  %1184 = vst.msk [vmem:[%s2300_s3 + $0x18] sm:$0xff] %vm31_vm0, %v915_v52  ;;  %v925_v59 = vmul.f32 -0.5, %v1480_v47  ;;  %v928_v62 = vand.u32 2147483647, %v1480_v47  ;;  %vm921_vm8 = vcmp.lt.f32.partialorder %v1480_v47, 1000.0 }
 0x156   :  { %1483 = vlog2.f32 %v922_v49  ;;  %v1430_v53 = vpop.f32.mrf.mxu0  ;;  %v926_v61 = vadd.f32 1.0, %v925_v59  ;;  %vm929_vm7 = vcmp.lt.f32.partialorder %v928_v62, 0.0004427343 }
 0x158   :  { %v1431_v54 = vpop.f32.mrf.mxu0  ;;  %v927_v2 = vmul.f32 %v1480_v47, %v926_v61 }
 0x159   :  { %v1432_v56 = vadd.f32 %v1431_v54, %v1430_v53  ;;  %v1482_v57 = vpop.eup %1481 }
 0x15a   :  { %v942_v58 = vadd.f32 1.0, %v1482_v57  ;;  %v945_v63 = vmul.f32 -0.5, %v1482_v57  ;;  %v948_v5 = vand.u32 2147483647, %v1482_v57  ;;  %vm941_vm10 = vcmp.lt.f32.partialorder %v1482_v57, 1000.0 }
 0x15b   :  { %v843_v60 = vadd.f32 %v1432_v56, %v739_v55 }
 0x15c   :  { %1485 = vlog2.f32 %v942_v58  ;;  %v946_v3 = vadd.f32 1.0, %v945_v63  ;;  %vm949_vm9 = vcmp.lt.f32.partialorder %v948_v5, 0.0004427343 }
 0x15d   :  { %844 = vst.msk [vmem:[#allocation2 + $0x30] sm:$0xff] %vm31_vm0, %v843_v60 }
 0x15e   :  { %v947_v9 = vmul.f32 %v1482_v57, %v946_v3 }
 0x163   :  { %v1484_v0 = vpop.eup %1483 }
 0x164   :  { %v924_v1 = vmul.f32 0.6931472, %v1484_v0  ;;  %v959_v4 = vld [vmem:[#allocation2 + $0x30] sm:$0xff] }
 0x165   :  { %v960_v6 = vmul.f32 1.442695, %v959_v4 }
 0x166   :  { %v930_v50 = vsel %vm929_vm7, %v927_v2, %v924_v1 }
 0x167   :  { %v931_v7 = vsel %vm921_vm8, %v930_v50, %v918_v30  ;;  %1487 = vpow2.f32 %v960_v6 }
 0x168   :  { %v932_v8 = vmul.f32 0.9, %v931_v7 }
 0x169   :  { %v1486_v10 = vpop.eup %1485 }
 0x16a   :  { %v933_v11 = vadd.f32 0.01, %v932_v8  ;;  %v944_v12 = vmul.f32 0.6931472, %v1486_v10 }
 0x16c   :  { %v934_v13 = vmax.f32 %v933_v11, 1e-05  ;;  %v950_v14 = vsel %vm949_vm9, %v947_v9, %v944_v12 }
 0x16d   :  { %v951_v16 = vsel %vm941_vm10, %v950_v14, %v938_v40 }
 0x16e   :  { %v935_v15 = vmin.f32 %v934_v13, 100000.0  ;;  %v952_v51 = vmul.f32 0.9, %v951_v16 }
 0x170   :  { %1185 = vst.msk [vmem:[%s2300_s3 + $0x20] sm:$0xff] %vm31_vm0, %v935_v15  ;;  %v953_v17 = vadd.f32 0.01, %v952_v51 }
 0x172   :  { %v954_v18 = vmax.f32 %v953_v17, 1e-05 }
 0x174   :  { %v1488_v19 = vpop.eup %1487  ;;  %v955_v20 = vmin.f32 %v954_v18, 100000.0 }
 0x175   :  { %v963_v21 = vadd.f32 1.0, %v1488_v19  ;;  %v966_v23 = vmul.f32 -0.5, %v1488_v19  ;;  %v969_v25 = vand.u32 2147483647, %v1488_v19  ;;  %vm962_vm12 = vcmp.lt.f32.partialorder %v1488_v19, 1000.0 }
 0x176   :  { %v956_v22 = vadd.f32 2.78, %v955_v20 }
 0x177   :  { %1489 = vlog2.f32 %v963_v21  ;;  %v967_v24 = vadd.f32 1.0, %v966_v23  ;;  %vm970_vm11 = vcmp.lt.f32.partialorder %v969_v25, 0.0004427343 }
 0x178   :  { %1186 = vst.msk [vmem:[%s2300_s3 + $0x28] sm:$0xff] %vm31_vm0, %v956_v22 }
 0x179   :  { %v968_v28 = vmul.f32 %v1488_v19, %v967_v24 }
 0x184   :  { %v1490_v26 = vpop.eup %1489 }
 0x185   :  { %v965_v27 = vmul.f32 0.6931472, %v1490_v26 }
 0x187   :  { %v971_v29 = vsel %vm970_vm11, %v968_v28, %v965_v27 }
 0x188   :  { %v972_v30 = vsel %vm962_vm12, %v971_v29, %v959_v4 }
 0x189   :  { %v973_v31 = vmul.f32 0.9, %v972_v30 }
 0x18b   :  { %v974_v32 = vadd.f32 0.01, %v973_v31 }
 0x18d   :  { %v975_v33 = vmax.f32 %v974_v32, 1e-05 }
 0x18f   :  { %v976_v34 = vmin.f32 %v975_v33, 100000.0 }
 0x191   :  { %1187 = vst.msk [vmem:[%s2300_s3 + $0x30] sm:$0xff] %vm31_vm0, %v976_v34 }
 0x192   :  { %983 = vsyncpa [#allocation4], 1 }

</bundles_post_ra>
